<compile_context>
chip_gen: v7x
topology: tpu7x:2x2x1
jax: 0.10.0
libtpu: 0.0.40
codegen_flags: <defaults>
</compile_context>

<pallas_src>
import math
import jax
import jax.numpy as jnp
from jax.experimental import pallas as pl
from jax.experimental.pallas import tpu as pltpu

# ----------------------- model dimensions (small, synthetic) -----------------------
B = 2            # batch
S = 8            # sequence length
D = 32           # hidden size
H = 4            # attention heads
HD = D // H      # head dim
N_LAYERS = 2     # number of GPT-2 blocks
LN_EPS = 1e-5
NEG = -1e9       # moderate mask sentinel (avoids -inf/NaN if dtypes ever narrow)


def _layernorm(h, g, b):
    mu = jnp.mean(h, axis=-1, keepdims=True)
    xc = h - mu
    var = jnp.mean(xc * xc, axis=-1, keepdims=True)
    return xc * jax.lax.rsqrt(var + LN_EPS) * g + b


# ------------------------------- fused kernel ---------------------------------------
def gpt2_stack_kernel(x_ref, mask_ref,
                      ln1_g_ref, ln1_b_ref,
                      w_qkv_ref, b_qkv_ref,
                      wo_ref, bo_ref,
                      ln2_g_ref, ln2_b_ref,
                      wfc_ref, bfc_ref, wmo_ref, bmo_ref,
                      lnf_g_ref, lnf_b_ref,
                      out_ref):
    """All GPT-2 blocks + ln_f for ONE batch row. x is (S, D); mask is (S, S) additive."""
    x = x_ref[...]                       # (S, D) f32, stays resident across the stack
    mask = mask_ref[...]                 # (S, S) additive: causal + padding
    c_gelu = math.sqrt(2.0 / math.pi)

    for l in range(N_LAYERS):            # static unroll (tiny layer count), weights stay in VMEM
        # ---------------- self-attention (pre-LN) ----------------
        h = _layernorm(x, ln1_g_ref[l], ln1_b_ref[l])                     # (S, D) f32
        # Fused QKV: one lane-dense (S,D)@(D,3D) matmul; 1/sqrt(HD) already folded into
        # the Q columns/bias of w_qkv at prepare_params time.
        qkv = jnp.dot(h.astype(jnp.bfloat16), w_qkv_ref[l],
                      preferred_element_type=jnp.float32) + b_qkv_ref[l]  # (S, 3D) f32
        qkv = qkv.astype(jnp.bfloat16)                                    # single cast

        # Split heads (HF layout: [q | k | v], each column-grouped by head).
        q = jnp.stack([qkv[:, 0 * D + i * HD: 0 * D + (i + 1) * HD] for i in range(H)], axis=0)
        k = jnp.stack([qkv[:, 1 * D + i * HD: 1 * D + (i + 1) * HD] for i in range(H)], axis=0)
        v = jnp.stack([qkv[:, 2 * D + i * HD: 2 * D + (i + 1) * HD] for i in range(H)], axis=0)

        s = jnp.einsum('hqe,hke->hqk', q, k,
                       preferred_element_type=jnp.float32)                # (H, S, S), pre-scaled
        s = s + mask                                                      # broadcast over heads
        s = s - jnp.max(s, axis=-1, keepdims=True)
        p = jnp.exp(s)
        p = p * pl.reciprocal(jnp.sum(p, axis=-1, keepdims=True), approx=True)

        ctx = jnp.einsum('hqk,hke->hqe', p.astype(jnp.bfloat16), v,
                         preferred_element_type=jnp.float32)              # (H, S, HD)
        # Concatenate heads back on lanes -> (S, D); ONE fused output projection matmul.
        ctx2d = jnp.concatenate([ctx[i] for i in range(H)], axis=-1).astype(jnp.bfloat16)
        x = x + jnp.dot(ctx2d, wo_ref[l],
                        preferred_element_type=jnp.float32) + bo_ref[l]   # residual

        # ---------------- MLP (pre-LN), f32 elementwise / bf16 matmuls ----------------
        h2 = _layernorm(x, ln2_g_ref[l], ln2_b_ref[l])
        f = jnp.dot(h2.astype(jnp.bfloat16), wfc_ref[l],
                    preferred_element_type=jnp.float32) + bfc_ref[l]      # (S, 4D) lane-dense
        f = 0.5 * f * (1.0 + jnp.tanh(c_gelu * (f + 0.044715 * f * f * f)))   # gelu_new
        x = x + jnp.dot(f.astype(jnp.bfloat16), wmo_ref[l],
                        preferred_element_type=jnp.float32) + bmo_ref[l]

    out_ref[...] = _layernorm(x, lnf_g_ref[...], lnf_b_ref[...])          # single final store


# ------------------------------- wrappers -------------------------------------------
def _build_mask(extended_attention_mask):
    """(B,1,1,S) HF additive mask -> (B, S, S) causal+padding additive mask (per batch row)."""
    ext = extended_attention_mask.reshape(B, 1, S).astype(jnp.float32)    # (B, 1, S)
    causal = jnp.arange(S)[:, None] >= jnp.arange(S)[None, :]             # (S, S)
    return jnp.where(causal[None, :, :], 0.0, NEG) + ext                  # (B, S, S)


def blocks_wrapper_forward(hidden_states, extended_attention_mask, stacked_params, lnf_params):
    mask = _build_mask(extended_attention_mask)
    weights = (*stacked_params, *lnf_params)
    # Whole (stacked) weight arrays live in VMEM; same block for every grid step.
    weight_specs = [pl.BlockSpec(w.shape, lambda b, n=w.ndim: (0,) * n) for w in weights]
    out = pl.pallas_call(
        gpt2_stack_kernel,
        out_shape=jax.ShapeDtypeStruct((B, S, D), jnp.float32),
        grid=(B,),                                            # batch axis -> parallel grid
        in_specs=[pl.BlockSpec((None, S, D), lambda b: (b, 0, 0)),
                  pl.BlockSpec((None, S, S), lambda b: (b, 0, 0))] + weight_specs,
        out_specs=pl.BlockSpec((None, S, D), lambda b: (b, 0, 0)),
        compiler_params=pltpu.CompilerParams(
            dimension_semantics=("parallel",),                # lets v7x use both TensorCores
            vmem_limit_bytes=32 * 1024 * 1024),
    )(hidden_states, mask, *weights)
    return out


# ----------------------- parameters: HF layout -> kernel layout ---------------------
def init_params(key):
    """Deterministic per-layer params in HF GPT-2 (Conv1D: x @ W + b) layout."""
    layers = []
    for _ in range(N_LAYERS):
        key, k1, k2, k3, k4 = jax.random.split(key, 5)
        layers.append(dict(
            ln1_g=jnp.ones((D,), jnp.float32), ln1_b=jnp.zeros((D,), jnp.float32),
            w_attn=0.02 * jax.random.normal(k1, (D, 3 * D), jnp.float32),   # c_attn W
            b_attn=jnp.zeros((3 * D,), jnp.float32),
            w_proj=0.02 * jax.random.normal(k2, (D, D), jnp.float32),       # attn c_proj W
            b_proj=jnp.zeros((D,), jnp.float32),
            ln2_g=jnp.ones((D,), jnp.float32), ln2_b=jnp.zeros((D,), jnp.float32),
            w_fc=0.02 * jax.random.normal(k3, (D, 4 * D), jnp.float32),     # mlp c_fc W
            b_fc=jnp.zeros((4 * D,), jnp.float32),
            w_mo=0.02 * jax.random.normal(k4, (4 * D, D), jnp.float32),     # mlp c_proj W
            b_mo=jnp.zeros((D,), jnp.float32)))
    lnf = (jnp.ones((D,), jnp.float32), jnp.zeros((D,), jnp.float32))
    return layers, lnf


def prepare_params(layers, lnf):
    """Stack per-layer params with a leading layer axis.

    * c_attn weight/bias stay fused (D, 3D) / (1, 3D), with the 1/sqrt(HD) attention
      scale folded into the Q columns (constant fold at pack time, no in-kernel mul).
    * MXU operands pre-cast to bf16; biases / LN params kept f32 and lane-dense.
    """
    scale = 1.0 / math.sqrt(HD)

    def stack(fn):
        return jnp.stack([fn(p) for p in layers], axis=0)

    w_qkv = stack(lambda p: p['w_attn'].at[:, :D].multiply(scale)).astype(jnp.bfloat16)
    b_qkv = stack(lambda p: p['b_attn'].at[:D].multiply(scale).reshape(1, 3 * D))
    wo = stack(lambda p: p['w_proj']).astype(jnp.bfloat16)                 # (L, D, D)
    bo = stack(lambda p: p['b_proj'].reshape(1, D))
    ln1_g = stack(lambda p: p['ln1_g'].reshape(1, D))
    ln1_b = stack(lambda p: p['ln1_b'].reshape(1, D))
    ln2_g = stack(lambda p: p['ln2_g'].reshape(1, D))
    ln2_b = stack(lambda p: p['ln2_b'].reshape(1, D))
    wfc = stack(lambda p: p['w_fc']).astype(jnp.bfloat16)                  # (L, D, 4D)
    bfc = stack(lambda p: p['b_fc'].reshape(1, 4 * D))
    wmo = stack(lambda p: p['w_mo']).astype(jnp.bfloat16)                  # (L, 4D, D)
    bmo = stack(lambda p: p['b_mo'].reshape(1, D))
    stacked = (ln1_g, ln1_b, w_qkv, b_qkv, wo, bo,
               ln2_g, ln2_b, wfc, bfc, wmo, bmo)
    lnf_k = (lnf[0].reshape(1, D), lnf[1].reshape(1, D))
    return stacked, lnf_k


# ------------------------------------ main -------------------------------------------
if __name__ == "__main__":
    key = jax.random.PRNGKey(0)
    key, kx = jax.random.split(key)
    hidden_states = jax.random.normal(kx, (B, S, D), jnp.float32)

    # standard HF extended attention mask: (B, 1, 1, S), 0 for attend / -10000 for masked
    attention_mask = jnp.array([[1] * S,
                                [1] * (S - 2) + [0] * 2], dtype=jnp.float32)
    extended_attention_mask = (1.0 - attention_mask)[:, None, None, :] * -10000.0

    layers, lnf = init_params(key)
    stacked_params, lnf_params = prepare_params(layers, lnf)

    forward = jax.jit(blocks_wrapper_forward)
    out = forward(hidden_states, extended_attention_mask, stacked_params, lnf_params)
    out = jax.block_until_ready(out)
    assert out.shape == (B, S, D) and out.dtype == jnp.float32
    assert bool(jnp.all(jnp.isfinite(out)))
    print("KERNEL_OK")
</pallas_src>

<mosaic_0001>
module attributes {stable_mosaic.version = 11 : i64} {
  func.func @gpt2_stack_kernel(%arg0: i32, %arg1: memref<1x8x32xf32, #tpu.memory_space<vmem>>, %arg2: memref<1x8x8xf32, #tpu.memory_space<vmem>>, %arg3: memref<2x1x32xf32, #tpu.memory_space<vmem>>, %arg4: memref<2x1x32xf32, #tpu.memory_space<vmem>>, %arg5: memref<2x32x96xbf16, #tpu.memory_space<vmem>>, %arg6: memref<2x1x96xf32, #tpu.memory_space<vmem>>, %arg7: memref<2x32x32xbf16, #tpu.memory_space<vmem>>, %arg8: memref<2x1x32xf32, #tpu.memory_space<vmem>>, %arg9: memref<2x1x32xf32, #tpu.memory_space<vmem>>, %arg10: memref<2x1x32xf32, #tpu.memory_space<vmem>>, %arg11: memref<2x32x128xbf16, #tpu.memory_space<vmem>>, %arg12: memref<2x1x128xf32, #tpu.memory_space<vmem>>, %arg13: memref<2x128x32xbf16, #tpu.memory_space<vmem>>, %arg14: memref<2x1x32xf32, #tpu.memory_space<vmem>>, %arg15: memref<1x32xf32, #tpu.memory_space<vmem>>, %arg16: memref<1x32xf32, #tpu.memory_space<vmem>>, %arg17: memref<1x8x32xf32, #tpu.memory_space<vmem>>) attributes {dimension_semantics = [#tpu.dimension_semantics<parallel>], iteration_bounds = array<i64: 2>, scalar_prefetch = 0 : i64, scratch_operands = 0 : i64, tpu.core_type = #tpu.core_type<tc>, window_params = [{transform_indices = @transform_0, window_bounds = array<i64: 1, 8, 32>}, {transform_indices = @transform_1, window_bounds = array<i64: 1, 8, 8>}, {pipeline_mode = #tpu.pipeline_mode<synchronous>, transform_indices = @transform_2, window_bounds = array<i64: 2, 1, 32>}, {pipeline_mode = #tpu.pipeline_mode<synchronous>, transform_indices = @transform_3, window_bounds = array<i64: 2, 1, 32>}, {pipeline_mode = #tpu.pipeline_mode<synchronous>, transform_indices = @transform_4, window_bounds = array<i64: 2, 32, 96>}, {pipeline_mode = #tpu.pipeline_mode<synchronous>, transform_indices = @transform_5, window_bounds = array<i64: 2, 1, 96>}, {pipeline_mode = #tpu.pipeline_mode<synchronous>, transform_indices = @transform_6, window_bounds = array<i64: 2, 32, 32>}, {pipeline_mode = #tpu.pipeline_mode<synchronous>, transform_indices = @transform_7, window_bounds = array<i64: 2, 1, 32>}, {pipeline_mode = #tpu.pipeline_mode<synchronous>, transform_indices = @transform_8, window_bounds = array<i64: 2, 1, 32>}, {pipeline_mode = #tpu.pipeline_mode<synchronous>, transform_indices = @transform_9, window_bounds = array<i64: 2, 1, 32>}, {pipeline_mode = #tpu.pipeline_mode<synchronous>, transform_indices = @transform_10, window_bounds = array<i64: 2, 32, 128>}, {pipeline_mode = #tpu.pipeline_mode<synchronous>, transform_indices = @transform_11, window_bounds = array<i64: 2, 1, 128>}, {pipeline_mode = #tpu.pipeline_mode<synchronous>, transform_indices = @transform_12, window_bounds = array<i64: 2, 128, 32>}, {pipeline_mode = #tpu.pipeline_mode<synchronous>, transform_indices = @transform_13, window_bounds = array<i64: 2, 1, 32>}, {pipeline_mode = #tpu.pipeline_mode<synchronous>, transform_indices = @transform_14, window_bounds = array<i64: 1, 32>}, {pipeline_mode = #tpu.pipeline_mode<synchronous>, transform_indices = @transform_15, window_bounds = array<i64: 1, 32>}, {transform_indices = @transform_16, window_bounds = array<i64: 1, 8, 32>}]} {
    %c0 = arith.constant 0 : index
    %c0_0 = arith.constant 0 : index
    %c0_1 = arith.constant 0 : index
    %0 = vector.load %arg1[%c0, %c0_0, %c0_1] : memref<1x8x32xf32, #tpu.memory_space<vmem>>, vector<1x8x32xf32>
    %1 = vector.shape_cast %0 : vector<1x8x32xf32> to vector<8x32xf32>
    %c0_2 = arith.constant 0 : index
    %c0_3 = arith.constant 0 : index
    %c0_4 = arith.constant 0 : index
    %2 = vector.load %arg2[%c0_2, %c0_3, %c0_4] : memref<1x8x8xf32, #tpu.memory_space<vmem>>, vector<1x8x8xf32>
    %3 = vector.shape_cast %2 : vector<1x8x8xf32> to vector<8x8xf32>
    %c0_5 = arith.constant 0 : index
    %c0_6 = arith.constant 0 : index
    %c0_7 = arith.constant 0 : index
    %4 = vector.load %arg3[%c0_5, %c0_6, %c0_7] : memref<2x1x32xf32, #tpu.memory_space<vmem>>, vector<1x1x32xf32>
    %5 = vector.shape_cast %4 : vector<1x1x32xf32> to vector<1x32xf32>
    %c0_8 = arith.constant 0 : index
    %c0_9 = arith.constant 0 : index
    %c0_10 = arith.constant 0 : index
    %6 = vector.load %arg4[%c0_8, %c0_9, %c0_10] : memref<2x1x32xf32, #tpu.memory_space<vmem>>, vector<1x1x32xf32>
    %7 = vector.shape_cast %6 : vector<1x1x32xf32> to vector<1x32xf32>
    %cst = arith.constant dense<0.000000e+00> : vector<8xf32>
    %8 = vector.multi_reduction <add>, %1, %cst [1] : vector<8x32xf32> to vector<8xf32>
    %9 = vector.shape_cast %8 : vector<8xf32> to vector<8x1xf32>
    %cst_11 = arith.constant 3.200000e+01 : f32
    %10 = vector.broadcast %cst_11 : f32 to vector<8x1xf32>
    %11 = arith.divf %9, %10 : vector<8x1xf32>
    %12 = vector.broadcast %11 : vector<8x1xf32> to vector<8x32xf32>
    %13 = arith.subf %1, %12 : vector<8x32xf32>
    %14 = arith.mulf %13, %13 : vector<8x32xf32>
    %cst_12 = arith.constant dense<0.000000e+00> : vector<8xf32>
    %15 = vector.multi_reduction <add>, %14, %cst_12 [1] : vector<8x32xf32> to vector<8xf32>
    %16 = vector.shape_cast %15 : vector<8xf32> to vector<8x1xf32>
    %cst_13 = arith.constant 3.200000e+01 : f32
    %17 = vector.broadcast %cst_13 : f32 to vector<8x1xf32>
    %18 = arith.divf %16, %17 : vector<8x1xf32>
    %cst_14 = arith.constant 9.99999974E-6 : f32
    %19 = vector.broadcast %cst_14 : f32 to vector<8x1xf32>
    %20 = arith.addf %18, %19 : vector<8x1xf32>
    %21 = math.rsqrt %20 : vector<8x1xf32>
    %22 = vector.broadcast %21 : vector<8x1xf32> to vector<8x32xf32>
    %23 = arith.mulf %13, %22 : vector<8x32xf32>
    %24 = vector.broadcast %5 : vector<1x32xf32> to vector<8x32xf32>
    %25 = arith.mulf %23, %24 : vector<8x32xf32>
    %26 = vector.broadcast %7 : vector<1x32xf32> to vector<8x32xf32>
    %27 = arith.addf %25, %26 : vector<8x32xf32>
    %28 = arith.truncf %27 : vector<8x32xf32> to vector<8x32xbf16>
    %c0_15 = arith.constant 0 : index
    %c0_16 = arith.constant 0 : index
    %c0_17 = arith.constant 0 : index
    %29 = vector.load %arg5[%c0_15, %c0_16, %c0_17] : memref<2x32x96xbf16, #tpu.memory_space<vmem>>, vector<1x32x96xbf16>
    %30 = vector.shape_cast %29 : vector<1x32x96xbf16> to vector<32x96xbf16>
    %cst_18 = arith.constant dense<0.000000e+00> : vector<8x96xf32>
    %31 = tpu.matmul %28, %30, %cst_18 {dimension_numbers = #tpu.dot_dimension_numbers<[1], [0], [0], [1], [0, 0, 1, 1], [], []>} : vector<8x32xbf16>, vector<32x96xbf16>, vector<8x96xf32> -> vector<8x96xf32>
    %c0_19 = arith.constant 0 : index
    %c0_20 = arith.constant 0 : index
    %c0_21 = arith.constant 0 : index
    %32 = vector.load %arg6[%c0_19, %c0_20, %c0_21] : memref<2x1x96xf32, #tpu.memory_space<vmem>>, vector<1x1x96xf32>
    %33 = vector.shape_cast %32 : vector<1x1x96xf32> to vector<1x96xf32>
    %34 = vector.broadcast %33 : vector<1x96xf32> to vector<8x96xf32>
    %35 = arith.addf %31, %34 : vector<8x96xf32>
    %36 = arith.truncf %35 : vector<8x96xf32> to vector<8x96xbf16>
    %37 = vector.extract_strided_slice %36 {offsets = [0, 0], sizes = [8, 8], strides = [1, 1]} : vector<8x96xbf16> to vector<8x8xbf16>
    %38 = vector.extract_strided_slice %36 {offsets = [0, 8], sizes = [8, 8], strides = [1, 1]} : vector<8x96xbf16> to vector<8x8xbf16>
    %39 = vector.extract_strided_slice %36 {offsets = [0, 16], sizes = [8, 8], strides = [1, 1]} : vector<8x96xbf16> to vector<8x8xbf16>
    %40 = vector.extract_strided_slice %36 {offsets = [0, 24], sizes = [8, 8], strides = [1, 1]} : vector<8x96xbf16> to vector<8x8xbf16>
    %41 = vector.shape_cast %37 : vector<8x8xbf16> to vector<1x8x8xbf16>
    %42 = vector.shape_cast %38 : vector<8x8xbf16> to vector<1x8x8xbf16>
    %43 = vector.shape_cast %39 : vector<8x8xbf16> to vector<1x8x8xbf16>
    %44 = vector.shape_cast %40 : vector<8x8xbf16> to vector<1x8x8xbf16>
    %45 = tpu.concatenate %41, %42, %43, %44 in 0 : vector<1x8x8xbf16>, vector<1x8x8xbf16>, vector<1x8x8xbf16>, vector<1x8x8xbf16> -> vector<4x8x8xbf16>
    %46 = vector.extract_strided_slice %36 {offsets = [0, 32], sizes = [8, 8], strides = [1, 1]} : vector<8x96xbf16> to vector<8x8xbf16>
    %47 = vector.extract_strided_slice %36 {offsets = [0, 40], sizes = [8, 8], strides = [1, 1]} : vector<8x96xbf16> to vector<8x8xbf16>
    %48 = vector.extract_strided_slice %36 {offsets = [0, 48], sizes = [8, 8], strides = [1, 1]} : vector<8x96xbf16> to vector<8x8xbf16>
    %49 = vector.extract_strided_slice %36 {offsets = [0, 56], sizes = [8, 8], strides = [1, 1]} : vector<8x96xbf16> to vector<8x8xbf16>
    %50 = vector.shape_cast %46 : vector<8x8xbf16> to vector<1x8x8xbf16>
    %51 = vector.shape_cast %47 : vector<8x8xbf16> to vector<1x8x8xbf16>
    %52 = vector.shape_cast %48 : vector<8x8xbf16> to vector<1x8x8xbf16>
    %53 = vector.shape_cast %49 : vector<8x8xbf16> to vector<1x8x8xbf16>
    %54 = tpu.concatenate %50, %51, %52, %53 in 0 : vector<1x8x8xbf16>, vector<1x8x8xbf16>, vector<1x8x8xbf16>, vector<1x8x8xbf16> -> vector<4x8x8xbf16>
    %55 = vector.extract_strided_slice %36 {offsets = [0, 64], sizes = [8, 8], strides = [1, 1]} : vector<8x96xbf16> to vector<8x8xbf16>
    %56 = vector.extract_strided_slice %36 {offsets = [0, 72], sizes = [8, 8], strides = [1, 1]} : vector<8x96xbf16> to vector<8x8xbf16>
    %57 = vector.extract_strided_slice %36 {offsets = [0, 80], sizes = [8, 8], strides = [1, 1]} : vector<8x96xbf16> to vector<8x8xbf16>
    %58 = vector.extract_strided_slice %36 {offsets = [0, 88], sizes = [8, 8], strides = [1, 1]} : vector<8x96xbf16> to vector<8x8xbf16>
    %59 = vector.shape_cast %55 : vector<8x8xbf16> to vector<1x8x8xbf16>
    %60 = vector.shape_cast %56 : vector<8x8xbf16> to vector<1x8x8xbf16>
    %61 = vector.shape_cast %57 : vector<8x8xbf16> to vector<1x8x8xbf16>
    %62 = vector.shape_cast %58 : vector<8x8xbf16> to vector<1x8x8xbf16>
    %63 = tpu.concatenate %59, %60, %61, %62 in 0 : vector<1x8x8xbf16>, vector<1x8x8xbf16>, vector<1x8x8xbf16>, vector<1x8x8xbf16> -> vector<4x8x8xbf16>
    "tpu.trace_start"() <{level = 10 : i32, message = "hqe,hke->hqk"}> : () -> ()
    %cst_22 = arith.constant dense<0.000000e+00> : vector<4x8x8xf32>
    %64 = tpu.matmul %45, %54, %cst_22 {dimension_numbers = #tpu.dot_dimension_numbers<[2], [2], [1], [1], [0, 0, 0, 1, 1, 1], [0], [0]>} : vector<4x8x8xbf16>, vector<4x8x8xbf16>, vector<4x8x8xf32> -> vector<4x8x8xf32>
    "tpu.trace_stop"() : () -> ()
    %65 = vector.shape_cast %3 : vector<8x8xf32> to vector<1x8x8xf32>
    %66 = vector.broadcast %65 : vector<1x8x8xf32> to vector<4x8x8xf32>
    %67 = arith.addf %64, %66 : vector<4x8x8xf32>
    %cst_23 = arith.constant dense<0xFF800000> : vector<4x8xf32>
    %68 = vector.multi_reduction <maximumf>, %67, %cst_23 [2] : vector<4x8x8xf32> to vector<4x8xf32>
    %69 = vector.shape_cast %68 : vector<4x8xf32> to vector<4x8x1xf32>
    %70 = vector.broadcast %69 : vector<4x8x1xf32> to vector<4x8x8xf32>
    %71 = arith.subf %67, %70 : vector<4x8x8xf32>
    %72 = math.exp %71 : vector<4x8x8xf32>
    %cst_24 = arith.constant dense<0.000000e+00> : vector<4x8xf32>
    %73 = vector.multi_reduction <add>, %72, %cst_24 [2] : vector<4x8x8xf32> to vector<4x8xf32>
    %74 = vector.shape_cast %73 : vector<4x8xf32> to vector<4x8x1xf32>
    %75 = tpu.reciprocal %74 {approx = true} : vector<4x8x1xf32> -> vector<4x8x1xf32>
    %76 = vector.broadcast %75 : vector<4x8x1xf32> to vector<4x8x8xf32>
    %77 = arith.mulf %72, %76 : vector<4x8x8xf32>
    %78 = arith.truncf %77 : vector<4x8x8xf32> to vector<4x8x8xbf16>
    "tpu.trace_start"() <{level = 10 : i32, message = "hqk,hke->hqe"}> : () -> ()
    %cst_25 = arith.constant dense<0.000000e+00> : vector<4x8x8xf32>
    %79 = tpu.matmul %78, %63, %cst_25 {dimension_numbers = #tpu.dot_dimension_numbers<[2], [1], [1], [2], [0, 0, 0, 1, 1, 2], [0], [0]>} : vector<4x8x8xbf16>, vector<4x8x8xbf16>, vector<4x8x8xf32> -> vector<4x8x8xf32>
    "tpu.trace_stop"() : () -> ()
    %80 = vector.extract_strided_slice %79 {offsets = [0, 0, 0], sizes = [1, 8, 8], strides = [1, 1, 1]} : vector<4x8x8xf32> to vector<1x8x8xf32>
    %81 = vector.shape_cast %80 : vector<1x8x8xf32> to vector<8x8xf32>
    %82 = vector.extract_strided_slice %79 {offsets = [1, 0, 0], sizes = [1, 8, 8], strides = [1, 1, 1]} : vector<4x8x8xf32> to vector<1x8x8xf32>
    %83 = vector.shape_cast %82 : vector<1x8x8xf32> to vector<8x8xf32>
    %84 = vector.extract_strided_slice %79 {offsets = [2, 0, 0], sizes = [1, 8, 8], strides = [1, 1, 1]} : vector<4x8x8xf32> to vector<1x8x8xf32>
    %85 = vector.shape_cast %84 : vector<1x8x8xf32> to vector<8x8xf32>
    %86 = vector.extract_strided_slice %79 {offsets = [3, 0, 0], sizes = [1, 8, 8], strides = [1, 1, 1]} : vector<4x8x8xf32> to vector<1x8x8xf32>
    %87 = vector.shape_cast %86 : vector<1x8x8xf32> to vector<8x8xf32>
    %88 = tpu.concatenate %81, %83, %85, %87 in 1 : vector<8x8xf32>, vector<8x8xf32>, vector<8x8xf32>, vector<8x8xf32> -> vector<8x32xf32>
    %89 = arith.truncf %88 : vector<8x32xf32> to vector<8x32xbf16>
    %c0_26 = arith.constant 0 : index
    %c0_27 = arith.constant 0 : index
    %c0_28 = arith.constant 0 : index
    %90 = vector.load %arg7[%c0_26, %c0_27, %c0_28] : memref<2x32x32xbf16, #tpu.memory_space<vmem>>, vector<1x32x32xbf16>
    %91 = vector.shape_cast %90 : vector<1x32x32xbf16> to vector<32x32xbf16>
    %cst_29 = arith.constant dense<0.000000e+00> : vector<8x32xf32>
    %92 = tpu.matmul %89, %91, %cst_29 {dimension_numbers = #tpu.dot_dimension_numbers<[1], [0], [0], [1], [0, 0, 1, 1], [], []>} : vector<8x32xbf16>, vector<32x32xbf16>, vector<8x32xf32> -> vector<8x32xf32>
    %93 = arith.addf %1, %92 : vector<8x32xf32>
    %c0_30 = arith.constant 0 : index
    %c0_31 = arith.constant 0 : index
    %c0_32 = arith.constant 0 : index
    %94 = vector.load %arg8[%c0_30, %c0_31, %c0_32] : memref<2x1x32xf32, #tpu.memory_space<vmem>>, vector<1x1x32xf32>
    %95 = vector.shape_cast %94 : vector<1x1x32xf32> to vector<1x32xf32>
    %96 = vector.broadcast %95 : vector<1x32xf32> to vector<8x32xf32>
    %97 = arith.addf %93, %96 : vector<8x32xf32>
    %c0_33 = arith.constant 0 : index
    %c0_34 = arith.constant 0 : index
    %c0_35 = arith.constant 0 : index
    %98 = vector.load %arg9[%c0_33, %c0_34, %c0_35] : memref<2x1x32xf32, #tpu.memory_space<vmem>>, vector<1x1x32xf32>
    %99 = vector.shape_cast %98 : vector<1x1x32xf32> to vector<1x32xf32>
    %c0_36 = arith.constant 0 : index
    %c0_37 = arith.constant 0 : index
    %c0_38 = arith.constant 0 : index
    %100 = vector.load %arg10[%c0_36, %c0_37, %c0_38] : memref<2x1x32xf32, #tpu.memory_space<vmem>>, vector<1x1x32xf32>
    %101 = vector.shape_cast %100 : vector<1x1x32xf32> to vector<1x32xf32>
    %cst_39 = arith.constant dense<0.000000e+00> : vector<8xf32>
    %102 = vector.multi_reduction <add>, %97, %cst_39 [1] : vector<8x32xf32> to vector<8xf32>
    %103 = vector.shape_cast %102 : vector<8xf32> to vector<8x1xf32>
    %cst_40 = arith.constant 3.200000e+01 : f32
    %104 = vector.broadcast %cst_40 : f32 to vector<8x1xf32>
    %105 = arith.divf %103, %104 : vector<8x1xf32>
    %106 = vector.broadcast %105 : vector<8x1xf32> to vector<8x32xf32>
    %107 = arith.subf %97, %106 : vector<8x32xf32>
    %108 = arith.mulf %107, %107 : vector<8x32xf32>
    %cst_41 = arith.constant dense<0.000000e+00> : vector<8xf32>
    %109 = vector.multi_reduction <add>, %108, %cst_41 [1] : vector<8x32xf32> to vector<8xf32>
    %110 = vector.shape_cast %109 : vector<8xf32> to vector<8x1xf32>
    %cst_42 = arith.constant 3.200000e+01 : f32
    %111 = vector.broadcast %cst_42 : f32 to vector<8x1xf32>
    %112 = arith.divf %110, %111 : vector<8x1xf32>
    %cst_43 = arith.constant 9.99999974E-6 : f32
    %113 = vector.broadcast %cst_43 : f32 to vector<8x1xf32>
    %114 = arith.addf %112, %113 : vector<8x1xf32>
    %115 = math.rsqrt %114 : vector<8x1xf32>
    %116 = vector.broadcast %115 : vector<8x1xf32> to vector<8x32xf32>
    %117 = arith.mulf %107, %116 : vector<8x32xf32>
    %118 = vector.broadcast %99 : vector<1x32xf32> to vector<8x32xf32>
    %119 = arith.mulf %117, %118 : vector<8x32xf32>
    %120 = vector.broadcast %101 : vector<1x32xf32> to vector<8x32xf32>
    %121 = arith.addf %119, %120 : vector<8x32xf32>
    %122 = arith.truncf %121 : vector<8x32xf32> to vector<8x32xbf16>
    %c0_44 = arith.constant 0 : index
    %c0_45 = arith.constant 0 : index
    %c0_46 = arith.constant 0 : index
    %123 = vector.load %arg11[%c0_44, %c0_45, %c0_46] : memref<2x32x128xbf16, #tpu.memory_space<vmem>>, vector<1x32x128xbf16>
    %124 = vector.shape_cast %123 : vector<1x32x128xbf16> to vector<32x128xbf16>
    %cst_47 = arith.constant dense<0.000000e+00> : vector<8x128xf32>
    %125 = tpu.matmul %122, %124, %cst_47 {dimension_numbers = #tpu.dot_dimension_numbers<[1], [0], [0], [1], [0, 0, 1, 1], [], []>} : vector<8x32xbf16>, vector<32x128xbf16>, vector<8x128xf32> -> vector<8x128xf32>
    %c0_48 = arith.constant 0 : index
    %c0_49 = arith.constant 0 : index
    %c0_50 = arith.constant 0 : index
    %126 = vector.load %arg12[%c0_48, %c0_49, %c0_50] : memref<2x1x128xf32, #tpu.memory_space<vmem>>, vector<1x1x128xf32>
    %127 = vector.shape_cast %126 : vector<1x1x128xf32> to vector<1x128xf32>
    %128 = vector.broadcast %127 : vector<1x128xf32> to vector<8x128xf32>
    %129 = arith.addf %125, %128 : vector<8x128xf32>
    %cst_51 = arith.constant 5.000000e-01 : f32
    %130 = vector.broadcast %cst_51 : f32 to vector<8x128xf32>
    %131 = arith.mulf %130, %129 : vector<8x128xf32>
    %cst_52 = arith.constant 4.471500e-02 : f32
    %132 = vector.broadcast %cst_52 : f32 to vector<8x128xf32>
    %133 = arith.mulf %132, %129 : vector<8x128xf32>
    %134 = arith.mulf %133, %129 : vector<8x128xf32>
    %135 = arith.mulf %134, %129 : vector<8x128xf32>
    %136 = arith.addf %129, %135 : vector<8x128xf32>
    %cst_53 = arith.constant 0.797884583 : f32
    %137 = vector.broadcast %cst_53 : f32 to vector<8x128xf32>
    %138 = arith.mulf %137, %136 : vector<8x128xf32>
    %139 = math.tanh %138 : vector<8x128xf32>
    %cst_54 = arith.constant 1.000000e+00 : f32
    %140 = vector.broadcast %cst_54 : f32 to vector<8x128xf32>
    %141 = arith.addf %140, %139 : vector<8x128xf32>
    %142 = arith.mulf %131, %141 : vector<8x128xf32>
    %143 = arith.truncf %142 : vector<8x128xf32> to vector<8x128xbf16>
    %c0_55 = arith.constant 0 : index
    %c0_56 = arith.constant 0 : index
    %c0_57 = arith.constant 0 : index
    %144 = vector.load %arg13[%c0_55, %c0_56, %c0_57] : memref<2x128x32xbf16, #tpu.memory_space<vmem>>, vector<1x128x32xbf16>
    %145 = vector.shape_cast %144 : vector<1x128x32xbf16> to vector<128x32xbf16>
    %cst_58 = arith.constant dense<0.000000e+00> : vector<8x32xf32>
    %146 = tpu.matmul %143, %145, %cst_58 {dimension_numbers = #tpu.dot_dimension_numbers<[1], [0], [0], [1], [0, 0, 1, 1], [], []>} : vector<8x128xbf16>, vector<128x32xbf16>, vector<8x32xf32> -> vector<8x32xf32>
    %147 = arith.addf %97, %146 : vector<8x32xf32>
    %c0_59 = arith.constant 0 : index
    %c0_60 = arith.constant 0 : index
    %c0_61 = arith.constant 0 : index
    %148 = vector.load %arg14[%c0_59, %c0_60, %c0_61] : memref<2x1x32xf32, #tpu.memory_space<vmem>>, vector<1x1x32xf32>
    %149 = vector.shape_cast %148 : vector<1x1x32xf32> to vector<1x32xf32>
    %150 = vector.broadcast %149 : vector<1x32xf32> to vector<8x32xf32>
    %151 = arith.addf %147, %150 : vector<8x32xf32>
    %c1 = arith.constant 1 : index
    %c0_62 = arith.constant 0 : index
    %c0_63 = arith.constant 0 : index
    %152 = vector.load %arg3[%c1, %c0_62, %c0_63] : memref<2x1x32xf32, #tpu.memory_space<vmem>>, vector<1x1x32xf32>
    %153 = vector.shape_cast %152 : vector<1x1x32xf32> to vector<1x32xf32>
    %c1_64 = arith.constant 1 : index
    %c0_65 = arith.constant 0 : index
    %c0_66 = arith.constant 0 : index
    %154 = vector.load %arg4[%c1_64, %c0_65, %c0_66] : memref<2x1x32xf32, #tpu.memory_space<vmem>>, vector<1x1x32xf32>
    %155 = vector.shape_cast %154 : vector<1x1x32xf32> to vector<1x32xf32>
    %cst_67 = arith.constant dense<0.000000e+00> : vector<8xf32>
    %156 = vector.multi_reduction <add>, %151, %cst_67 [1] : vector<8x32xf32> to vector<8xf32>
    %157 = vector.shape_cast %156 : vector<8xf32> to vector<8x1xf32>
    %cst_68 = arith.constant 3.200000e+01 : f32
    %158 = vector.broadcast %cst_68 : f32 to vector<8x1xf32>
    %159 = arith.divf %157, %158 : vector<8x1xf32>
    %160 = vector.broadcast %159 : vector<8x1xf32> to vector<8x32xf32>
    %161 = arith.subf %151, %160 : vector<8x32xf32>
    %162 = arith.mulf %161, %161 : vector<8x32xf32>
    %cst_69 = arith.constant dense<0.000000e+00> : vector<8xf32>
    %163 = vector.multi_reduction <add>, %162, %cst_69 [1] : vector<8x32xf32> to vector<8xf32>
    %164 = vector.shape_cast %163 : vector<8xf32> to vector<8x1xf32>
    %cst_70 = arith.constant 3.200000e+01 : f32
    %165 = vector.broadcast %cst_70 : f32 to vector<8x1xf32>
    %166 = arith.divf %164, %165 : vector<8x1xf32>
    %cst_71 = arith.constant 9.99999974E-6 : f32
    %167 = vector.broadcast %cst_71 : f32 to vector<8x1xf32>
    %168 = arith.addf %166, %167 : vector<8x1xf32>
    %169 = math.rsqrt %168 : vector<8x1xf32>
    %170 = vector.broadcast %169 : vector<8x1xf32> to vector<8x32xf32>
    %171 = arith.mulf %161, %170 : vector<8x32xf32>
    %172 = vector.broadcast %153 : vector<1x32xf32> to vector<8x32xf32>
    %173 = arith.mulf %171, %172 : vector<8x32xf32>
    %174 = vector.broadcast %155 : vector<1x32xf32> to vector<8x32xf32>
    %175 = arith.addf %173, %174 : vector<8x32xf32>
    %176 = arith.truncf %175 : vector<8x32xf32> to vector<8x32xbf16>
    %c1_72 = arith.constant 1 : index
    %c0_73 = arith.constant 0 : index
    %c0_74 = arith.constant 0 : index
    %177 = vector.load %arg5[%c1_72, %c0_73, %c0_74] : memref<2x32x96xbf16, #tpu.memory_space<vmem>>, vector<1x32x96xbf16>
    %178 = vector.shape_cast %177 : vector<1x32x96xbf16> to vector<32x96xbf16>
    %cst_75 = arith.constant dense<0.000000e+00> : vector<8x96xf32>
    %179 = tpu.matmul %176, %178, %cst_75 {dimension_numbers = #tpu.dot_dimension_numbers<[1], [0], [0], [1], [0, 0, 1, 1], [], []>} : vector<8x32xbf16>, vector<32x96xbf16>, vector<8x96xf32> -> vector<8x96xf32>
    %c1_76 = arith.constant 1 : index
    %c0_77 = arith.constant 0 : index
    %c0_78 = arith.constant 0 : index
    %180 = vector.load %arg6[%c1_76, %c0_77, %c0_78] : memref<2x1x96xf32, #tpu.memory_space<vmem>>, vector<1x1x96xf32>
    %181 = vector.shape_cast %180 : vector<1x1x96xf32> to vector<1x96xf32>
    %182 = vector.broadcast %181 : vector<1x96xf32> to vector<8x96xf32>
    %183 = arith.addf %179, %182 : vector<8x96xf32>
    %184 = arith.truncf %183 : vector<8x96xf32> to vector<8x96xbf16>
    %185 = vector.extract_strided_slice %184 {offsets = [0, 0], sizes = [8, 8], strides = [1, 1]} : vector<8x96xbf16> to vector<8x8xbf16>
    %186 = vector.extract_strided_slice %184 {offsets = [0, 8], sizes = [8, 8], strides = [1, 1]} : vector<8x96xbf16> to vector<8x8xbf16>
    %187 = vector.extract_strided_slice %184 {offsets = [0, 16], sizes = [8, 8], strides = [1, 1]} : vector<8x96xbf16> to vector<8x8xbf16>
    %188 = vector.extract_strided_slice %184 {offsets = [0, 24], sizes = [8, 8], strides = [1, 1]} : vector<8x96xbf16> to vector<8x8xbf16>
    %189 = vector.shape_cast %185 : vector<8x8xbf16> to vector<1x8x8xbf16>
    %190 = vector.shape_cast %186 : vector<8x8xbf16> to vector<1x8x8xbf16>
    %191 = vector.shape_cast %187 : vector<8x8xbf16> to vector<1x8x8xbf16>
    %192 = vector.shape_cast %188 : vector<8x8xbf16> to vector<1x8x8xbf16>
    %193 = tpu.concatenate %189, %190, %191, %192 in 0 : vector<1x8x8xbf16>, vector<1x8x8xbf16>, vector<1x8x8xbf16>, vector<1x8x8xbf16> -> vector<4x8x8xbf16>
    %194 = vector.extract_strided_slice %184 {offsets = [0, 32], sizes = [8, 8], strides = [1, 1]} : vector<8x96xbf16> to vector<8x8xbf16>
    %195 = vector.extract_strided_slice %184 {offsets = [0, 40], sizes = [8, 8], strides = [1, 1]} : vector<8x96xbf16> to vector<8x8xbf16>
    %196 = vector.extract_strided_slice %184 {offsets = [0, 48], sizes = [8, 8], strides = [1, 1]} : vector<8x96xbf16> to vector<8x8xbf16>
    %197 = vector.extract_strided_slice %184 {offsets = [0, 56], sizes = [8, 8], strides = [1, 1]} : vector<8x96xbf16> to vector<8x8xbf16>
    %198 = vector.shape_cast %194 : vector<8x8xbf16> to vector<1x8x8xbf16>
    %199 = vector.shape_cast %195 : vector<8x8xbf16> to vector<1x8x8xbf16>
    %200 = vector.shape_cast %196 : vector<8x8xbf16> to vector<1x8x8xbf16>
    %201 = vector.shape_cast %197 : vector<8x8xbf16> to vector<1x8x8xbf16>
    %202 = tpu.concatenate %198, %199, %200, %201 in 0 : vector<1x8x8xbf16>, vector<1x8x8xbf16>, vector<1x8x8xbf16>, vector<1x8x8xbf16> -> vector<4x8x8xbf16>
    %203 = vector.extract_strided_slice %184 {offsets = [0, 64], sizes = [8, 8], strides = [1, 1]} : vector<8x96xbf16> to vector<8x8xbf16>
    %204 = vector.extract_strided_slice %184 {offsets = [0, 72], sizes = [8, 8], strides = [1, 1]} : vector<8x96xbf16> to vector<8x8xbf16>
    %205 = vector.extract_strided_slice %184 {offsets = [0, 80], sizes = [8, 8], strides = [1, 1]} : vector<8x96xbf16> to vector<8x8xbf16>
    %206 = vector.extract_strided_slice %184 {offsets = [0, 88], sizes = [8, 8], strides = [1, 1]} : vector<8x96xbf16> to vector<8x8xbf16>
    %207 = vector.shape_cast %203 : vector<8x8xbf16> to vector<1x8x8xbf16>
    %208 = vector.shape_cast %204 : vector<8x8xbf16> to vector<1x8x8xbf16>
    %209 = vector.shape_cast %205 : vector<8x8xbf16> to vector<1x8x8xbf16>
    %210 = vector.shape_cast %206 : vector<8x8xbf16> to vector<1x8x8xbf16>
    %211 = tpu.concatenate %207, %208, %209, %210 in 0 : vector<1x8x8xbf16>, vector<1x8x8xbf16>, vector<1x8x8xbf16>, vector<1x8x8xbf16> -> vector<4x8x8xbf16>
    "tpu.trace_start"() <{level = 10 : i32, message = "hqe,hke->hqk"}> : () -> ()
    %cst_79 = arith.constant dense<0.000000e+00> : vector<4x8x8xf32>
    %212 = tpu.matmul %193, %202, %cst_79 {dimension_numbers = #tpu.dot_dimension_numbers<[2], [2], [1], [1], [0, 0, 0, 1, 1, 1], [0], [0]>} : vector<4x8x8xbf16>, vector<4x8x8xbf16>, vector<4x8x8xf32> -> vector<4x8x8xf32>
    "tpu.trace_stop"() : () -> ()
    %213 = vector.shape_cast %3 : vector<8x8xf32> to vector<1x8x8xf32>
    %214 = vector.broadcast %213 : vector<1x8x8xf32> to vector<4x8x8xf32>
    %215 = arith.addf %212, %214 : vector<4x8x8xf32>
    %cst_80 = arith.constant dense<0xFF800000> : vector<4x8xf32>
    %216 = vector.multi_reduction <maximumf>, %215, %cst_80 [2] : vector<4x8x8xf32> to vector<4x8xf32>
    %217 = vector.shape_cast %216 : vector<4x8xf32> to vector<4x8x1xf32>
    %218 = vector.broadcast %217 : vector<4x8x1xf32> to vector<4x8x8xf32>
    %219 = arith.subf %215, %218 : vector<4x8x8xf32>
    %220 = math.exp %219 : vector<4x8x8xf32>
    %cst_81 = arith.constant dense<0.000000e+00> : vector<4x8xf32>
    %221 = vector.multi_reduction <add>, %220, %cst_81 [2] : vector<4x8x8xf32> to vector<4x8xf32>
    %222 = vector.shape_cast %221 : vector<4x8xf32> to vector<4x8x1xf32>
    %223 = tpu.reciprocal %222 {approx = true} : vector<4x8x1xf32> -> vector<4x8x1xf32>
    %224 = vector.broadcast %223 : vector<4x8x1xf32> to vector<4x8x8xf32>
    %225 = arith.mulf %220, %224 : vector<4x8x8xf32>
    %226 = arith.truncf %225 : vector<4x8x8xf32> to vector<4x8x8xbf16>
    "tpu.trace_start"() <{level = 10 : i32, message = "hqk,hke->hqe"}> : () -> ()
    %cst_82 = arith.constant dense<0.000000e+00> : vector<4x8x8xf32>
    %227 = tpu.matmul %226, %211, %cst_82 {dimension_numbers = #tpu.dot_dimension_numbers<[2], [1], [1], [2], [0, 0, 0, 1, 1, 2], [0], [0]>} : vector<4x8x8xbf16>, vector<4x8x8xbf16>, vector<4x8x8xf32> -> vector<4x8x8xf32>
    "tpu.trace_stop"() : () -> ()
    %228 = vector.extract_strided_slice %227 {offsets = [0, 0, 0], sizes = [1, 8, 8], strides = [1, 1, 1]} : vector<4x8x8xf32> to vector<1x8x8xf32>
    %229 = vector.shape_cast %228 : vector<1x8x8xf32> to vector<8x8xf32>
    %230 = vector.extract_strided_slice %227 {offsets = [1, 0, 0], sizes = [1, 8, 8], strides = [1, 1, 1]} : vector<4x8x8xf32> to vector<1x8x8xf32>
    %231 = vector.shape_cast %230 : vector<1x8x8xf32> to vector<8x8xf32>
    %232 = vector.extract_strided_slice %227 {offsets = [2, 0, 0], sizes = [1, 8, 8], strides = [1, 1, 1]} : vector<4x8x8xf32> to vector<1x8x8xf32>
    %233 = vector.shape_cast %232 : vector<1x8x8xf32> to vector<8x8xf32>
    %234 = vector.extract_strided_slice %227 {offsets = [3, 0, 0], sizes = [1, 8, 8], strides = [1, 1, 1]} : vector<4x8x8xf32> to vector<1x8x8xf32>
    %235 = vector.shape_cast %234 : vector<1x8x8xf32> to vector<8x8xf32>
    %236 = tpu.concatenate %229, %231, %233, %235 in 1 : vector<8x8xf32>, vector<8x8xf32>, vector<8x8xf32>, vector<8x8xf32> -> vector<8x32xf32>
    %237 = arith.truncf %236 : vector<8x32xf32> to vector<8x32xbf16>
    %c1_83 = arith.constant 1 : index
    %c0_84 = arith.constant 0 : index
    %c0_85 = arith.constant 0 : index
    %238 = vector.load %arg7[%c1_83, %c0_84, %c0_85] : memref<2x32x32xbf16, #tpu.memory_space<vmem>>, vector<1x32x32xbf16>
    %239 = vector.shape_cast %238 : vector<1x32x32xbf16> to vector<32x32xbf16>
    %cst_86 = arith.constant dense<0.000000e+00> : vector<8x32xf32>
    %240 = tpu.matmul %237, %239, %cst_86 {dimension_numbers = #tpu.dot_dimension_numbers<[1], [0], [0], [1], [0, 0, 1, 1], [], []>} : vector<8x32xbf16>, vector<32x32xbf16>, vector<8x32xf32> -> vector<8x32xf32>
    %241 = arith.addf %151, %240 : vector<8x32xf32>
    %c1_87 = arith.constant 1 : index
    %c0_88 = arith.constant 0 : index
    %c0_89 = arith.constant 0 : index
    %242 = vector.load %arg8[%c1_87, %c0_88, %c0_89] : memref<2x1x32xf32, #tpu.memory_space<vmem>>, vector<1x1x32xf32>
    %243 = vector.shape_cast %242 : vector<1x1x32xf32> to vector<1x32xf32>
    %244 = vector.broadcast %243 : vector<1x32xf32> to vector<8x32xf32>
    %245 = arith.addf %241, %244 : vector<8x32xf32>
    %c1_90 = arith.constant 1 : index
    %c0_91 = arith.constant 0 : index
    %c0_92 = arith.constant 0 : index
    %246 = vector.load %arg9[%c1_90, %c0_91, %c0_92] : memref<2x1x32xf32, #tpu.memory_space<vmem>>, vector<1x1x32xf32>
    %247 = vector.shape_cast %246 : vector<1x1x32xf32> to vector<1x32xf32>
    %c1_93 = arith.constant 1 : index
    %c0_94 = arith.constant 0 : index
    %c0_95 = arith.constant 0 : index
    %248 = vector.load %arg10[%c1_93, %c0_94, %c0_95] : memref<2x1x32xf32, #tpu.memory_space<vmem>>, vector<1x1x32xf32>
    %249 = vector.shape_cast %248 : vector<1x1x32xf32> to vector<1x32xf32>
    %cst_96 = arith.constant dense<0.000000e+00> : vector<8xf32>
    %250 = vector.multi_reduction <add>, %245, %cst_96 [1] : vector<8x32xf32> to vector<8xf32>
    %251 = vector.shape_cast %250 : vector<8xf32> to vector<8x1xf32>
    %cst_97 = arith.constant 3.200000e+01 : f32
    %252 = vector.broadcast %cst_97 : f32 to vector<8x1xf32>
    %253 = arith.divf %251, %252 : vector<8x1xf32>
    %254 = vector.broadcast %253 : vector<8x1xf32> to vector<8x32xf32>
    %255 = arith.subf %245, %254 : vector<8x32xf32>
    %256 = arith.mulf %255, %255 : vector<8x32xf32>
    %cst_98 = arith.constant dense<0.000000e+00> : vector<8xf32>
    %257 = vector.multi_reduction <add>, %256, %cst_98 [1] : vector<8x32xf32> to vector<8xf32>
    %258 = vector.shape_cast %257 : vector<8xf32> to vector<8x1xf32>
    %cst_99 = arith.constant 3.200000e+01 : f32
    %259 = vector.broadcast %cst_99 : f32 to vector<8x1xf32>
    %260 = arith.divf %258, %259 : vector<8x1xf32>
    %cst_100 = arith.constant 9.99999974E-6 : f32
    %261 = vector.broadcast %cst_100 : f32 to vector<8x1xf32>
    %262 = arith.addf %260, %261 : vector<8x1xf32>
    %263 = math.rsqrt %262 : vector<8x1xf32>
    %264 = vector.broadcast %263 : vector<8x1xf32> to vector<8x32xf32>
    %265 = arith.mulf %255, %264 : vector<8x32xf32>
    %266 = vector.broadcast %247 : vector<1x32xf32> to vector<8x32xf32>
    %267 = arith.mulf %265, %266 : vector<8x32xf32>
    %268 = vector.broadcast %249 : vector<1x32xf32> to vector<8x32xf32>
    %269 = arith.addf %267, %268 : vector<8x32xf32>
    %270 = arith.truncf %269 : vector<8x32xf32> to vector<8x32xbf16>
    %c1_101 = arith.constant 1 : index
    %c0_102 = arith.constant 0 : index
    %c0_103 = arith.constant 0 : index
    %271 = vector.load %arg11[%c1_101, %c0_102, %c0_103] : memref<2x32x128xbf16, #tpu.memory_space<vmem>>, vector<1x32x128xbf16>
    %272 = vector.shape_cast %271 : vector<1x32x128xbf16> to vector<32x128xbf16>
    %cst_104 = arith.constant dense<0.000000e+00> : vector<8x128xf32>
    %273 = tpu.matmul %270, %272, %cst_104 {dimension_numbers = #tpu.dot_dimension_numbers<[1], [0], [0], [1], [0, 0, 1, 1], [], []>} : vector<8x32xbf16>, vector<32x128xbf16>, vector<8x128xf32> -> vector<8x128xf32>
    %c1_105 = arith.constant 1 : index
    %c0_106 = arith.constant 0 : index
    %c0_107 = arith.constant 0 : index
    %274 = vector.load %arg12[%c1_105, %c0_106, %c0_107] : memref<2x1x128xf32, #tpu.memory_space<vmem>>, vector<1x1x128xf32>
    %275 = vector.shape_cast %274 : vector<1x1x128xf32> to vector<1x128xf32>
    %276 = vector.broadcast %275 : vector<1x128xf32> to vector<8x128xf32>
    %277 = arith.addf %273, %276 : vector<8x128xf32>
    %cst_108 = arith.constant 5.000000e-01 : f32
    %278 = vector.broadcast %cst_108 : f32 to vector<8x128xf32>
    %279 = arith.mulf %278, %277 : vector<8x128xf32>
    %cst_109 = arith.constant 4.471500e-02 : f32
    %280 = vector.broadcast %cst_109 : f32 to vector<8x128xf32>
    %281 = arith.mulf %280, %277 : vector<8x128xf32>
    %282 = arith.mulf %281, %277 : vector<8x128xf32>
    %283 = arith.mulf %282, %277 : vector<8x128xf32>
    %284 = arith.addf %277, %283 : vector<8x128xf32>
    %cst_110 = arith.constant 0.797884583 : f32
    %285 = vector.broadcast %cst_110 : f32 to vector<8x128xf32>
    %286 = arith.mulf %285, %284 : vector<8x128xf32>
    %287 = math.tanh %286 : vector<8x128xf32>
    %cst_111 = arith.constant 1.000000e+00 : f32
    %288 = vector.broadcast %cst_111 : f32 to vector<8x128xf32>
    %289 = arith.addf %288, %287 : vector<8x128xf32>
    %290 = arith.mulf %279, %289 : vector<8x128xf32>
    %291 = arith.truncf %290 : vector<8x128xf32> to vector<8x128xbf16>
    %c1_112 = arith.constant 1 : index
    %c0_113 = arith.constant 0 : index
    %c0_114 = arith.constant 0 : index
    %292 = vector.load %arg13[%c1_112, %c0_113, %c0_114] : memref<2x128x32xbf16, #tpu.memory_space<vmem>>, vector<1x128x32xbf16>
    %293 = vector.shape_cast %292 : vector<1x128x32xbf16> to vector<128x32xbf16>
    %cst_115 = arith.constant dense<0.000000e+00> : vector<8x32xf32>
    %294 = tpu.matmul %291, %293, %cst_115 {dimension_numbers = #tpu.dot_dimension_numbers<[1], [0], [0], [1], [0, 0, 1, 1], [], []>} : vector<8x128xbf16>, vector<128x32xbf16>, vector<8x32xf32> -> vector<8x32xf32>
    %295 = arith.addf %245, %294 : vector<8x32xf32>
    %c1_116 = arith.constant 1 : index
    %c0_117 = arith.constant 0 : index
    %c0_118 = arith.constant 0 : index
    %296 = vector.load %arg14[%c1_116, %c0_117, %c0_118] : memref<2x1x32xf32, #tpu.memory_space<vmem>>, vector<1x1x32xf32>
    %297 = vector.shape_cast %296 : vector<1x1x32xf32> to vector<1x32xf32>
    %298 = vector.broadcast %297 : vector<1x32xf32> to vector<8x32xf32>
    %299 = arith.addf %295, %298 : vector<8x32xf32>
    %c0_119 = arith.constant 0 : index
    %c0_120 = arith.constant 0 : index
    %300 = vector.load %arg15[%c0_119, %c0_120] : memref<1x32xf32, #tpu.memory_space<vmem>>, vector<1x32xf32>
    %c0_121 = arith.constant 0 : index
    %c0_122 = arith.constant 0 : index
    %301 = vector.load %arg16[%c0_121, %c0_122] : memref<1x32xf32, #tpu.memory_space<vmem>>, vector<1x32xf32>
    %cst_123 = arith.constant dense<0.000000e+00> : vector<8xf32>
    %302 = vector.multi_reduction <add>, %299, %cst_123 [1] : vector<8x32xf32> to vector<8xf32>
    %303 = vector.shape_cast %302 : vector<8xf32> to vector<8x1xf32>
    %cst_124 = arith.constant 3.200000e+01 : f32
    %304 = vector.broadcast %cst_124 : f32 to vector<8x1xf32>
    %305 = arith.divf %303, %304 : vector<8x1xf32>
    %306 = vector.broadcast %305 : vector<8x1xf32> to vector<8x32xf32>
    %307 = arith.subf %299, %306 : vector<8x32xf32>
    %308 = arith.mulf %307, %307 : vector<8x32xf32>
    %cst_125 = arith.constant dense<0.000000e+00> : vector<8xf32>
    %309 = vector.multi_reduction <add>, %308, %cst_125 [1] : vector<8x32xf32> to vector<8xf32>
    %310 = vector.shape_cast %309 : vector<8xf32> to vector<8x1xf32>
    %cst_126 = arith.constant 3.200000e+01 : f32
    %311 = vector.broadcast %cst_126 : f32 to vector<8x1xf32>
    %312 = arith.divf %310, %311 : vector<8x1xf32>
    %cst_127 = arith.constant 9.99999974E-6 : f32
    %313 = vector.broadcast %cst_127 : f32 to vector<8x1xf32>
    %314 = arith.addf %312, %313 : vector<8x1xf32>
    %315 = math.rsqrt %314 : vector<8x1xf32>
    %316 = vector.broadcast %315 : vector<8x1xf32> to vector<8x32xf32>
    %317 = arith.mulf %307, %316 : vector<8x32xf32>
    %318 = vector.broadcast %300 : vector<1x32xf32> to vector<8x32xf32>
    %319 = arith.mulf %317, %318 : vector<8x32xf32>
    %320 = vector.broadcast %301 : vector<1x32xf32> to vector<8x32xf32>
    %321 = arith.addf %319, %320 : vector<8x32xf32>
    %c0_128 = arith.constant 0 : index
    %c0_129 = arith.constant 0 : index
    %c0_130 = arith.constant 0 : index
    %322 = vector.load %arg17[%c0_128, %c0_129, %c0_130] : memref<1x8x32xf32, #tpu.memory_space<vmem>>, vector<1x8x32xf32>
    %323 = vector.shape_cast %322 : vector<1x8x32xf32> to vector<8x32xf32>
    %324 = vector.shape_cast %321 : vector<8x32xf32> to vector<1x8x32xf32>
    tpu.vector_store %arg17[%c0_128, %c0_129, %c0_130], %324 {strides = array<i32>} : memref<1x8x32xf32, #tpu.memory_space<vmem>>, vector<1x8x32xf32>,
    return
  }
  func.func @transform_0(%arg0: i32) -> (i32, i32, i32) {
    %c0_i32 = arith.constant 0 : i32
    %c0_i32_0 = arith.constant 0 : i32
    %c0_i32_1 = arith.constant 0 : i32
    return %arg0, %c0_i32, %c0_i32_0 : i32, i32, i32
  }
  func.func @transform_1(%arg0: i32) -> (i32, i32, i32) {
    %c0_i32 = arith.constant 0 : i32
    %c0_i32_0 = arith.constant 0 : i32
    %c0_i32_1 = arith.constant 0 : i32
    return %arg0, %c0_i32, %c0_i32_0 : i32, i32, i32
  }
  func.func @transform_2(%arg0: i32) -> (i32, i32, i32) {
    %c0_i32 = arith.constant 0 : i32
    %c0_i32_0 = arith.constant 0 : i32
    %c0_i32_1 = arith.constant 0 : i32
    %c0_i32_2 = arith.constant 0 : i32
    return %c0_i32, %c0_i32_0, %c0_i32_1 : i32, i32, i32
  }
  func.func @transform_3(%arg0: i32) -> (i32, i32, i32) {
    %c0_i32 = arith.constant 0 : i32
    %c0_i32_0 = arith.constant 0 : i32
    %c0_i32_1 = arith.constant 0 : i32
    %c0_i32_2 = arith.constant 0 : i32
    return %c0_i32, %c0_i32_0, %c0_i32_1 : i32, i32, i32
  }
  func.func @transform_4(%arg0: i32) -> (i32, i32, i32) {
    %c0_i32 = arith.constant 0 : i32
    %c0_i32_0 = arith.constant 0 : i32
    %c0_i32_1 = arith.constant 0 : i32
    %c0_i32_2 = arith.constant 0 : i32
    return %c0_i32, %c0_i32_0, %c0_i32_1 : i32, i32, i32
  }
  func.func @transform_5(%arg0: i32) -> (i32, i32, i32) {
    %c0_i32 = arith.constant 0 : i32
    %c0_i32_0 = arith.constant 0 : i32
    %c0_i32_1 = arith.constant 0 : i32
    %c0_i32_2 = arith.constant 0 : i32
    return %c0_i32, %c0_i32_0, %c0_i32_1 : i32, i32, i32
  }
  func.func @transform_6(%arg0: i32) -> (i32, i32, i32) {
    %c0_i32 = arith.constant 0 : i32
    %c0_i32_0 = arith.constant 0 : i32
    %c0_i32_1 = arith.constant 0 : i32
    %c0_i32_2 = arith.constant 0 : i32
    return %c0_i32, %c0_i32_0, %c0_i32_1 : i32, i32, i32
  }
  func.func @transform_7(%arg0: i32) -> (i32, i32, i32) {
    %c0_i32 = arith.constant 0 : i32
    %c0_i32_0 = arith.constant 0 : i32
    %c0_i32_1 = arith.constant 0 : i32
    %c0_i32_2 = arith.constant 0 : i32
    return %c0_i32, %c0_i32_0, %c0_i32_1 : i32, i32, i32
  }
  func.func @transform_8(%arg0: i32) -> (i32, i32, i32) {
    %c0_i32 = arith.constant 0 : i32
    %c0_i32_0 = arith.constant 0 : i32
    %c0_i32_1 = arith.constant 0 : i32
    %c0_i32_2 = arith.constant 0 : i32
    return %c0_i32, %c0_i32_0, %c0_i32_1 : i32, i32, i32
  }
  func.func @transform_9(%arg0: i32) -> (i32, i32, i32) {
    %c0_i32 = arith.constant 0 : i32
    %c0_i32_0 = arith.constant 0 : i32
    %c0_i32_1 = arith.constant 0 : i32
    %c0_i32_2 = arith.constant 0 : i32
    return %c0_i32, %c0_i32_0, %c0_i32_1 : i32, i32, i32
  }
  func.func @transform_10(%arg0: i32) -> (i32, i32, i32) {
    %c0_i32 = arith.constant 0 : i32
    %c0_i32_0 = arith.constant 0 : i32
    %c0_i32_1 = arith.constant 0 : i32
    %c0_i32_2 = arith.constant 0 : i32
    return %c0_i32, %c0_i32_0, %c0_i32_1 : i32, i32, i32
  }
  func.func @transform_11(%arg0: i32) -> (i32, i32, i32) {
    %c0_i32 = arith.constant 0 : i32
    %c0_i32_0 = arith.constant 0 : i32
    %c0_i32_1 = arith.constant 0 : i32
    %c0_i32_2 = arith.constant 0 : i32
    return %c0_i32, %c0_i32_0, %c0_i32_1 : i32, i32, i32
  }
  func.func @transform_12(%arg0: i32) -> (i32, i32, i32) {
    %c0_i32 = arith.constant 0 : i32
    %c0_i32_0 = arith.constant 0 : i32
    %c0_i32_1 = arith.constant 0 : i32
    %c0_i32_2 = arith.constant 0 : i32
    return %c0_i32, %c0_i32_0, %c0_i32_1 : i32, i32, i32
  }
  func.func @transform_13(%arg0: i32) -> (i32, i32, i32) {
    %c0_i32 = arith.constant 0 : i32
    %c0_i32_0 = arith.constant 0 : i32
    %c0_i32_1 = arith.constant 0 : i32
    %c0_i32_2 = arith.constant 0 : i32
    return %c0_i32, %c0_i32_0, %c0_i32_1 : i32, i32, i32
  }
  func.func @transform_14(%arg0: i32) -> (i32, i32) {
    %c0_i32 = arith.constant 0 : i32
    %c0_i32_0 = arith.constant 0 : i32
    %c0_i32_1 = arith.constant 0 : i32
    return %c0_i32, %c0_i32_0 : i32, i32
  }
  func.func @transform_15(%arg0: i32) -> (i32, i32) {
    %c0_i32 = arith.constant 0 : i32
    %c0_i32_0 = arith.constant 0 : i32
    %c0_i32_1 = arith.constant 0 : i32
    return %c0_i32, %c0_i32_0 : i32, i32
  }
  func.func @transform_16(%arg0: i32) -> (i32, i32, i32) {
    %c0_i32 = arith.constant 0 : i32
    %c0_i32_0 = arith.constant 0 : i32
    %c0_i32_1 = arith.constant 0 : i32
    return %arg0, %c0_i32, %c0_i32_0 : i32, i32, i32
  }
}

</mosaic_0001>

<bundles_post_ra>
// kernel: blocks_wrapper_forward.1
= control target key start
LH: loop header
LB: loop body
LE: loop exit
PB: predicated region body
PF: predicated region fallthrough
CT: control target
= control target key end

     0   :  { %s3513_s0 = inlined_call_operand.vmem [shape: f32[2,8,32], index: 0, kind: input, shape index: {}]   ;;  %s3514_s1 = inlined_call_operand.vmem [shape: f32[2,8,8], index: 1, kind: input, shape index: {}]   ;;  %s3515_s2 = inlined_call_operand.vmem [shape: f32[2,1,32], index: 2, kind: input, shape index: {}]   ;;  %s3516_s3 = inlined_call_operand.vmem [shape: f32[2,1,32], index: 3, kind: input, shape index: {}]   ;;  %s3517_s4 = inlined_call_operand.vmem [shape: bf16[2,32,96], index: 4, kind: input, shape index: {}]   ;;  %s3518_s5 = inlined_call_operand.vmem [shape: f32[2,1,96], index: 5, kind: input, shape index: {}]   ;;  %s3519_s6 = inlined_call_operand.vmem [shape: bf16[2,32,32], index: 6, kind: input, shape index: {}]   ;;  %s3520_s7 = inlined_call_operand.vmem [shape: f32[2,1,32], index: 7, kind: input, shape index: {}]   ;;  %s3521_s8 = inlined_call_operand.vmem [shape: f32[2,1,32], index: 8, kind: input, shape index: {}]   ;;  %s3522_s9 = inlined_call_operand.vmem [shape: f32[2,1,32], index: 9, kind: input, shape index: {}]   ;;  %s3523_s10 = inlined_call_operand.vmem [shape: bf16[2,32,128], index: 10, kind: input, shape index: {}]   ;;  %s3524_s11 = inlined_call_operand.vmem [shape: f32[2,1,128], index: 11, kind: input, shape index: {}]   ;;  %s3525_s12 = inlined_call_operand.vmem [shape: bf16[2,128,32], index: 12, kind: input, shape index: {}]   ;;  %s3526_s13 = inlined_call_operand.vmem [shape: f32[2,1,32], index: 13, kind: input, shape index: {}]   ;;  %s3527_s14 = inlined_call_operand.vmem [shape: f32[1,32], index: 14, kind: input, shape index: {}]   ;;  %s3528_s15 = inlined_call_operand.vmem [shape: f32[1,32], index: 15, kind: input, shape index: {}]   ;;  %s3529_s16 = inlined_call_operand.hbm [shape: f32[2,8,32], index: 16, kind: output, shape index: {}]  }
   0x1   :  { %3541 = sst [smem:[#allocation7_spill]] %s3513_s0 }
   0x2   :  { %3542 = sst [smem:[#allocation8_spill]] %s3514_s1 }
   0x3   :  { %3543 = sst [smem:[#allocation9_spill]] %s3515_s2 }
   0x4   :  { %3544 = sst [smem:[#allocation10_spill]] %s3516_s3 }
   0x5   :  { %3545 = sst [smem:[#allocation11_spill]] %s3517_s4 }
   0x6   :  { %21 = vsyncpa [#allocation3], 0 }
   0x7   :  { %23 = vsyncpa [#allocation3 + $0x1], 0  ;;  %s2998_s21 = smov 0   ;;  %s3000_s22 = smov 0  }
   0x8   :  { %s3002_s23 = smov 0   ;;  %s3004_s24 = smov 0  }
   0x9 LB: > { %3546 = sst [smem:[#allocation5_spill]] %s2896_s23  ;;  %s3019_s25 = sadd.s32 4294967295, %s2900_s24   ;;  %s2900_s24 = sphi %s3004_s24, %s3567_s24   ;;  %s2896_s23 = sphi %s3002_s23, %s3564_s23   ;;  %s2892_s22 = sphi %s3000_s22, %s3566_s22   ;;  %s2888_s21 = sphi %s2998_s21, %s3565_s21  }
   0xa   : > { %s2348_s26 = sadd.s32 4294967294, %s2900_s24   ;;  %s3023_s27 = sadd.s32 1, %s2900_s24  }
   0xb   : > { %s382_s28 = sadd.s32 1, %s2896_s23  ;;  %s379_s29 = ssub.s32 %s2900_s24, %s3023_s27 }
   0xc   : > { %p392_p0 = scmp.ne.s32.totalorder %s2896_s23, %s2892_s22  ;;  %p380_p1 = scmp.eq.s32.totalorder %s379_s29, 0 }
   0xd   : > { %p393_p2 = scmp.eq.s32.totalorder %s3019_s25, 1  ;;  %p398_p3 = scmp.ne.s32.totalorder %s2892_s22, %s2888_s21 }
   0xe   : > { %p399_p4 = scmp.eq.s32.totalorder %s2348_s26, 1  ;;  %p2351_p7 = scmp.ge.s32.totalorder %s2900_s24, 1 }
   0xf   : > { %s3034_s30 = scalar_select %p380_p1, %s2896_s23, %s382_s28  }
  0x10   : > { %p3036_p5 = por %p393_p2, %p392_p0  ;;  %p3040_p6 = por %p399_p4, %p398_p3 }
  0x11   : > { %3547 = sst [smem:[#allocation6_spill]] %s3034_s30  ;;  %p473_p8 = scmp.lt.s32.totalorder %s2900_s24, 3 }
  0x13   : > { %p474_p9 = pnand %p2351_p7, %p473_p8 }
  0x14   : > { %p526_p10 = scmp.lt.s32.totalorder (!%p474_p9), %s3019_s25, 1  ;;  %vm539_vm0 = vcmask (!%p474_p9), 261120   ;;  %s3550_s28 = sld [smem:[#allocation7_spill]] (!%p474_p9)  ;;  %v2902_v8 = vmov (!%p474_p9), 0.0   ;;  %vm2903_vm1 = vmmov (!%p474_p9), 0   ;;  %vm645_vm2 = vcmask (!%p474_p9), 64512  }
  0x15   : > { %477 = sbr.rel (%p474_p9) target bundleno = 5617 (0x15f1), region = 84  ;;  %s3551_s4 = sld [smem:[#allocation11_spill]] (!%p474_p9)  ;;  %2531 = vmatprep.subr.bf16.mxu1 (!%p474_p9), %v2902_v8  ;;  %2535 = vmatprep.mubr.msk.bf16.mxu1 (!%p474_p9), %vm2903_vm1, %v2902_v8  ;;  %v2357_v20 = vld [vmem:[%s3518_s5] ss:$0 sm:$0xff] (!%p474_p9)  ;;  %vm889_vm3 = vcmask (!%p474_p9), 1043456   ;;  %vm1090_vm4 = vcmask (!%p474_p9), 130048  }
  0x16   : > { %2557 = vmatprep.subr.bf16.mxu0 (!%p474_p9), %v2902_v8  ;;  %2559 = vmatprep.mubr.msk.bf16.mxu0 (!%p474_p9), %vm2903_vm1, %v2902_v8  ;;  %s3552_s2 = sld [smem:[#allocation9_spill]] (!%p474_p9)  ;;  %s3553_s3 = sld [smem:[#allocation10_spill]] (!%p474_p9)  ;;  %vm1092_vm5 = vcmask (!%p474_p9), 195584  }
  0x17   : > { %s3538_s23 = smov (!%p474_p9), 104   ;;  %s3539_s30 = smov (!%p474_p9), 120  }
  0x18   : > { %s3554_s1 = sld [smem:[#allocation8_spill]] (!%p474_p9)  ;;  %s3558_s26 = smov (!%p474_p9), 96  }
  0x1b   : > { %v2764_v7 = vld [vmem:[%s3551_s4] sm:$0xff] (!%p474_p9)   ;;  %v2765_v9 = vld [vmem:[%s3551_s4 + $0x8] sm:$0xff] (!%p474_p9)  }
  0x1c   : > { %s3048_s18 = scalar_select %p526_p10, %s3019_s25, 1  ;;  %2532 = vmatpush3.bf16.msra.mxu1 %v2764_v7  ;;  %v2355_v14 = vld [vmem:[%s3552_s2] ss:$0 sm:$0xff] }
  0x1d   : > { %2533 = vmatprep.subr.bf16.mxu1 %v2902_v8  ;;  %v2356_v16 = vld [vmem:[%s3553_s3] ss:$0 sm:$0xff] }
  0x1e   : > { %s2353_s19 = sshll.u32 %s3048_s18, 3  ;;  %s3533_s18 = smov 64  }
  0x1f   : > { %s529_s29 = scalar_lea.vmem %s3550_s28, %s2353_s19  ;;  %s3540_s28 = smov 112  }
  0x20   : > { %v3056_v0 = vld [vmem:[%s529_s29] sm:$0xff]  ;;  %2534 = vmatpush3.bf16.msra.mxu1 %v2765_v9  ;;  %s3531_s29 = smov 96  }
  0x21   : > { %v540_v1 = vsel %vm539_vm0, %v3056_v0, 0.0  ;;  %2539 = vmatprep.subr.bf16.mxu1 %v2902_v8 }
  0x22   : > { %541 = vadd.xlane.f32.xlu0 %v540_v1 }
  0xaf   : > { %v542_v2 = vpop.xlane.xlu0 %541 }
  0xb0   : > { %v544_v3 = vmul.f32 0.03125, %v542_v2 }
  0xb2   : > { %v545_v4 = vsub.f32 %v3056_v0, %v544_v3 }
  0xb4   : > { %v546_v5 = vmul.f32 %v545_v4, %v545_v4 }
  0xb6   : > { %v547_v6 = vsel %vm539_vm0, %v546_v5, 0.0 }
  0xb7   : > { %548 = vadd.xlane.f32.xlu0 %v547_v6 }
 0x144   : > { %v549_v10 = vpop.xlane.xlu0 %548 }
 0x145   : > { %v550_v11 = vmul.f32 0.03125, %v549_v10 }
 0x147   : > { %v551_v12 = vadd.f32 1e-05, %v550_v11 }
 0x149   : > { %2792 = vrsqrt.f32 %v551_v12 }
 0x153   : > { %v2793_v13 = vpop.eup %2792 }
 0x154   : > { %v553_v15 = vmul.f32 %v2793_v13, %v545_v4 }
 0x156   : > { %v560_v17 = vmul.f32 %v2355_v14, %v553_v15 }
 0x158   : > { %v567_v18 = vadd.f32 %v2356_v16, %v560_v17 }
 0x15a   : > { %v568_v19 = vpack.c.bf16 %v567_v18, %v567_v18 }
 0x15c   : > { %2536 = vmatmul.mubr.msk.bf16.vlgmr.msra.gmra.mrb[0].mxu1 %vm539_vm0, %v568_v19 }
 0x15d   : > { %2541 = vmatprep.mubr.msk.bf16.mxu1 %vm2903_vm1, %v2902_v8 }
 0x22f   : > { %v629_v21 = vpop.f32.mrb[0].mxu1 }
 0x230   : > { %v630_v22 = vadd.f32 %v2357_v20, %v629_v21  ;;  %v2537_v23 = vpop.f32.mrb[1].mxu1 }
 0x231   : > { %v632_v24 = vpop.f32.mrb[2].mxu1 }
 0x232   : > { %v3088_v25 = vpack.c.bf16 %v630_v22, %v630_v22  ;;  %v2538_v26 = vpop.f32.mrb[3].mxu1 }
 0x234   : > { %641 = vrot.lane.b32.xlu0 %v3088_v25, %s3538_s23  ;;  %637 = vrot.lane.b32.xlu1 %v3088_v25, %s3539_s30  ;;  %s3556_s30 = smov 120   ;;  %s3559_s23 = smov 64  }
 0x238   : > { %639 = vrot.lane.b32.xlu1 %v3088_v25, %s3540_s28  ;;  %s3557_s28 = smov 104  }
 0x23c   : > { %643 = vrot.lane.b32.xlu1 %v3088_v25, %s3531_s29 }
 0x2a6   : > { %v3098_v27 = vpop.permute.xlu1 %637  ;;  %v3106_v29 = vpop.permute.xlu0 %641 }
 0x2a7   : > { %692 = vrot.lane.b32.xlu1 %v3098_v27, %s3531_s29 }
 0x2aa   : > { %v3102_v28 = vpop.permute.xlu1 %639 }
 0x2ab   : > { %740 = vrot.lane.b32.xlu1 %v3102_v28, %s3531_s29 }
 0x2ae   : > { %v644_v30 = vpop.permute.xlu1 %643 }
 0x2af   : > { %v650_v31 = vsel %vm645_vm2, %v644_v30, 0  ;;  %788 = vrot.lane.b32.xlu1 %v3106_v29, %s3531_s29  ;;  %s533_s29 = scalar_lea.vmem %s3554_s1, %s2353_s19  ;;  %s3536_s19 = smov 16  }
 0x2b0   : > { %2540 = vmatpush3.bf16.xpose.msra.mxu1 %v650_v31  ;;  %v3139_v38 = vld [vmem:[%s533_s29] sm:$0xff]  ;;  %s3535_s29 = smov 24  }
 0x2b1   : > { %2545 = vmatprep.subr.bf16.mxu1 %v2902_v8 }
 0x2b7   : > { %2542 = vmatmul.mubr.msk.bf16.vlgmr.msra.gmra.mrb[4].mxu1 %vm645_vm2, %v3088_v25 }
 0x2b8   : > { %2547 = vmatprep.mubr.msk.bf16.mxu1 %vm2903_vm1, %v2902_v8 }
 0x319   : > { %v693_v32 = vpop.permute.xlu1 %692 }
 0x31a   : > { %v698_v33 = vsel %vm645_vm2, %v693_v32, 0 }
 0x31b   : > { %2546 = vmatpush3.bf16.xpose.msra.mxu1 %v698_v33 }
 0x31c   : > { %2551 = vmatprep.subr.bf16.mxu1 %v2902_v8 }
 0x31d   : > { %v741_v34 = vpop.permute.xlu1 %740 }
 0x31e   : > { %v746_v36 = vsel %vm645_vm2, %v741_v34, 0 }
 0x321   : > { %v789_v35 = vpop.permute.xlu1 %788 }
 0x322   : > { %2548 = vmatmul.mubr.msk.bf16.vlgmr.msra.gmra.mrb[8].mxu1 %vm645_vm2, %v3098_v27  ;;  %v794_v37 = vsel %vm645_vm2, %v789_v35, 0 }
 0x323   : > { %2552 = vmatpush3.bf16.xpose.msra.mxu1 %v746_v36  ;;  %2558 = vmatpush3.bf16.xpose.msra.mxu0 %v794_v37 }
 0x324   : > { %2553 = vmatprep.mubr.msk.bf16.mxu1 %vm2903_vm1, %v2902_v8  ;;  %2563 = vmatprep.subr.bf16.mxu1 %v2902_v8 }
 0x325   : > { %2569 = vmatprep.subr.bf16.mxu0 %v2902_v8 }
 0x32a   : > { %2554 = vmatmul.mubr.msk.bf16.vlgmr.msra.gmra.mrb[12].mxu1 %vm645_vm2, %v3102_v28  ;;  %2560 = vmatmul.mubr.msk.bf16.vlgmr.msra.gmra.mrb[0].mxu0 %vm645_vm2, %v3106_v29 }
 0x32b   : > { %2565 = vmatprep.mubr.msk.bf16.mxu1 %vm2903_vm1, %v2902_v8  ;;  %2571 = vmatprep.mubr.msk.bf16.mxu0 %vm2903_vm1, %v2902_v8 }
 0x38a   : > { %v686_v39 = vpop.f32.mrb[4].mxu1 }
 0x38b   : > { %v687_v40 = vadd.f32 %v686_v39, %v3139_v38  ;;  %v2543_v41 = vpop.f32.mrb[5].mxu1 }
 0x38c   : > { %v689_v42 = vpop.f32.mrb[6].mxu1 }
 0x38d   : > { %v2544_v43 = vpop.f32.mrb[7].mxu1  ;;  %v836_v44 = vsel %vm645_vm2, %v687_v40, -inf }
 0x38e   : > { %837 = vmax.xlane.f32.xlu1 %v836_v44 }
 0x3f5   : > { %v734_v45 = vpop.f32.mrb[8].mxu1 }
 0x3f6   : > { %v735_v46 = vadd.f32 %v734_v45, %v3139_v38  ;;  %v2549_v47 = vpop.f32.mrb[9].mxu1 }
 0x3f7   : > { %v737_v48 = vpop.f32.mrb[10].mxu1 }
 0x3f8   : > { %v2550_v49 = vpop.f32.mrb[11].mxu1  ;;  %v839_v50 = vsel %vm645_vm2, %v735_v46, -inf }
 0x3f9   : > { %840 = vmax.xlane.f32.xlu0 %v839_v50  ;;  %v2766_v50 = vld [vmem:[%s3519_s6] sm:$0xff]  }
 0x3fd   : > { %v782_v51 = vpop.f32.mrb[12].mxu1  ;;  %v830_v52 = vpop.f32.mrb[0].mxu0 }
 0x3fe   : > { %v783_v53 = vadd.f32 %v782_v51, %v3139_v38  ;;  %v831_v54 = vadd.f32 %v830_v52, %v3139_v38  ;;  %v2555_v55 = vpop.f32.mrb[13].mxu1  ;;  %v2561_v56 = vpop.f32.mrb[1].mxu0  ;;  %v2767_v51 = vld [vmem:[%s3519_s6 + $0x8] sm:$0xff]  }
 0x3ff   : > { %v785_v57 = vpop.f32.mrb[14].mxu1  ;;  %v833_v58 = vpop.f32.mrb[2].mxu0 }
 0x400   : > { %v2556_v59 = vpop.f32.mrb[15].mxu1  ;;  %v2562_v60 = vpop.f32.mrb[3].mxu0  ;;  %v845_v61 = vsel %vm645_vm2, %v831_v54, -inf  ;;  %v842_v62 = vsel %vm645_vm2, %v783_v53, -inf }
 0x401   : > { %846 = vmax.xlane.f32.xlu0 %v845_v61  ;;  %843 = vmax.xlane.f32.xlu1 %v842_v62 }
 0x412   : > { %884 = vrot.lane.b32.xlu1 %v3088_v25, %s3533_s18 }
 0x41b   : > { %v838_v63 = vpop.xlane.xlu1 %837 }
 0x41c   : > { %v848_v1 = vsub.f32 %v687_v40, %v838_v63 }
 0x41e   : > { %v852_v2 = vmul.f32 1.442695, %v848_v1 }
 0x420   : > { %2794 = vpow2.f32 %v852_v2 }
 0x42a   : > { %v2795_v3 = vpop.eup %2794 }
 0x42b   : > { %v860_v4 = vsel %vm645_vm2, %v2795_v3, 0.0 }
 0x436   : > { %861 = vadd.xlane.f32.xlu1 %v860_v4 }
 0x447   : > { %981 = vrot.lane.b32.xlu1 %v3102_v28, %s3533_s18 }
 0x486   : > { %v841_v5 = vpop.xlane.xlu0 %840 }
 0x487   : > { %v849_v6 = vsub.f32 %v735_v46, %v841_v5 }
 0x489   : > { %v854_v7 = vmul.f32 1.442695, %v849_v6 }
 0x48b   : > { %2796 = vpow2.f32 %v854_v7 }
 0x48e   : > { %v847_v9 = vpop.xlane.xlu0 %846  ;;  %v844_v10 = vpop.xlane.xlu1 %843 }
 0x48f   : > { %v851_v11 = vsub.f32 %v831_v54, %v847_v9  ;;  %v850_v12 = vsub.f32 %v783_v53, %v844_v10  ;;  %v2372_v10 = vld [vmem:[%s3520_s7] ss:$0 sm:$0xff] }
 0x491   : > { %v858_v13 = vmul.f32 1.442695, %v851_v11  ;;  %v856_v14 = vmul.f32 1.442695, %v850_v12 }
 0x492   : > { %v885_v15 = vpop.permute.xlu1 %884 }
 0x493   : > { %2798 = vpow2.f32 %v858_v13  ;;  %v891_v16 = vsel %vm889_vm3, %v885_v15, 0 }
 0x494   : > { %2800 = vpow2.f32 %v856_v14  ;;  %2564 = vmatpush3.bf16.msra.mxu1 %v891_v16 }
 0x495   : > { %v2797_v17 = vpop.eup %2796  ;;  %2575 = vmatprep.subr.bf16.mxu1 %v2902_v8 }
 0x496   : > { %v863_v18 = vsel %vm645_vm2, %v2797_v17, 0.0 }
 0x497   : > { %864 = vadd.xlane.f32.xlu0 %v863_v18 }
 0x49d   : > { %v2799_v19 = vpop.eup %2798 }
 0x49e   : > { %v2801_v20 = vpop.eup %2800  ;;  %v869_v21 = vsel %vm645_vm2, %v2799_v19, 0.0 }
 0x49f   : > { %870 = vadd.xlane.f32.xlu0 %v869_v21  ;;  %v866_v22 = vsel %vm645_vm2, %v2801_v20, 0.0 }
 0x4a0   : > { %867 = vadd.xlane.f32.xlu1 %v866_v22  ;;  %v2769_v22 = vld [vmem:[%s3523_s10 + $0x8] sm:$0xff]  }
 0x4b1   : > { %1029 = vrot.lane.b32.xlu1 %v3106_v29, %s3533_s18 }
 0x4b5   : > { %933 = vrot.lane.b32.xlu0 %v3098_v27, %s3533_s18  ;;  %s3537_s18 = smov 8  }
 0x4c3   : > { %v862_v23 = vpop.xlane.xlu1 %861 }
 0x4c4   : > { %2802 = vrcp.f32 %v862_v23  ;;  %v2770_v23 = vld [vmem:[%s3525_s12] sm:$0xff]  }
 0x4c7   : > { %v982_v26 = vpop.permute.xlu1 %981 }
 0x4c8   : > { %v987_v30 = vsel %vm889_vm3, %v982_v26, 0 }
 0x4ce   : > { %v2803_v24 = vpop.eup %2802 }
 0x4cf   : > { %v876_v25 = vmul.f32 %v2803_v24, %v2795_v3 }
 0x4d1   : > { %v880_v28 = vpack.c.bf16 %v876_v25, %v876_v25 }
 0x4d3   : > { %2566 = vmatmul.mubr.msk.bf16.vlgmr.msra.gmra.mrb[16].mxu1 %vm645_vm2, %v880_v28 }
 0x4d4   : > { %2576 = vmatpush3.bf16.msra.mxu1 %v987_v30  ;;  %2577 = vmatprep.mubr.msk.bf16.mxu1 %vm2903_vm1, %v2902_v8  ;;  %v2373_v30 = vld [vmem:[%s3521_s8] ss:$0 sm:$0xff] }
 0x4d5   : > { %2587 = vmatprep.subr.bf16.mxu1 %v2902_v8 }
 0x524   : > { %v865_v29 = vpop.xlane.xlu0 %864 }
 0x525   : > { %2804 = vrcp.f32 %v865_v29 }
 0x52c   : > { %v871_v31 = vpop.xlane.xlu0 %870 }
 0x52d   : > { %2806 = vrcp.f32 %v871_v31  ;;  %v868_v27 = vpop.xlane.xlu1 %867  ;;  %v2374_v31 = vld [vmem:[%s3522_s9] ss:$0 sm:$0xff] }
 0x52e   : > { %2808 = vrcp.f32 %v868_v27 }
 0x52f   : > { %v2805_v32 = vpop.eup %2804 }
 0x530   : > { %v877_v33 = vmul.f32 %v2805_v32, %v2797_v17  ;;  %v934_v34 = vpop.permute.xlu0 %933 }
 0x531   : > { %v939_v35 = vsel %vm889_vm3, %v934_v34, 0  ;;  %v1030_v36 = vpop.permute.xlu1 %1029  ;;  %v2771_v34 = vld [vmem:[%s3525_s12 + $0x8] sm:$0xff]  }
 0x532   : > { %2570 = vmatpush3.bf16.msra.mxu0 %v939_v35  ;;  %v881_v37 = vpack.c.bf16 %v877_v33, %v877_v33  ;;  %v1035_v39 = vsel %vm889_vm3, %v1030_v36, 0  ;;  %v2772_v35 = vld [vmem:[%s3525_s12 + $0x10] sm:$0xff]   ;;  %v2773_v36 = vld [vmem:[%s3525_s12 + $0x18] sm:$0xff]  }
 0x533   : > { %2581 = vmatprep.subr.bf16.mxu0 %v2902_v8 }
 0x535   : > { %2572 = vmatmul.mubr.msk.bf16.vlgmr.msra.gmra.mrb[4].mxu0 %vm645_vm2, %v881_v37  ;;  %v2774_v37 = vld [vmem:[%s3525_s12 + $0x20] sm:$0xff]  }
 0x536   : > { %2582 = vmatpush3.bf16.msra.mxu0 %v1035_v39  ;;  %2583 = vmatprep.mubr.msk.bf16.mxu0 %vm2903_vm1, %v2902_v8  ;;  %v2775_v39 = vld [vmem:[%s3525_s12 + $0x28] sm:$0xff]  }
 0x537   : > { %v2807_v40 = vpop.eup %2806  ;;  %2595 = vmatprep.subr.bf16.mxu0 %v2902_v8 }
 0x538   : > { %v2809_v41 = vpop.eup %2808  ;;  %v879_v42 = vmul.f32 %v2807_v40, %v2799_v19  ;;  %v2776_v40 = vld [vmem:[%s3525_s12 + $0x30] sm:$0xff]  }
 0x539   : > { %v878_v43 = vmul.f32 %v2809_v41, %v2801_v20  ;;  %v2777_v41 = vld [vmem:[%s3525_s12 + $0x38] sm:$0xff]  }
 0x53a   : > { %v883_v44 = vpack.c.bf16 %v879_v42, %v879_v42  ;;  %v2375_v42 = vld [vmem:[%s3524_s11] ss:$0 sm:$0xff] }
 0x53b   : > { %v882_v45 = vpack.c.bf16 %v878_v43, %v878_v43 }
 0x53d   : > { %2578 = vmatmul.mubr.msk.bf16.vlgmr.msra.gmra.mrb[20].mxu1 %vm645_vm2, %v882_v45  ;;  %2584 = vmatmul.mubr.msk.bf16.vlgmr.msra.gmra.mrb[8].mxu0 %vm645_vm2, %v883_v44 }
 0x53e   : > { %2591 = vmatprep.mubr.msk.bf16.mxu1 %vm2903_vm1, %v2902_v8  ;;  %2599 = vmatprep.mubr.msk.bf16.mxu0 %vm2903_vm1, %v2902_v8 }
 0x53f   : > { %2588 = vmatpush3.bf16.msra.mxu1 %v2766_v50 }
 0x540   : > { %2589 = vmatprep.subr.bf16.mxu1 %v2902_v8 }
 0x543   : > { %2590 = vmatpush3.bf16.msra.mxu1 %v2767_v51 }
 0x544   : > { %2603 = vmatprep.subr.bf16.mxu1 %v2902_v8 }
 0x5a6   : > { %v927_v46 = vpop.f32.mrb[16].mxu1 }
 0x5a7   : > { %v2567_v47 = vpop.f32.mrb[17].mxu1 }
 0x5a8   : > { %v930_v48 = vpop.f32.mrb[18].mxu1 }
 0x5a9   : > { %v2568_v49 = vpop.f32.mrb[19].mxu1 }
 0x608   : > { %v975_v52 = vpop.f32.mrb[4].mxu0 }
 0x609   : > { %1078 = vrot.lane.b32.xlu0 %v975_v52, %s3537_s18  ;;  %v2573_v53 = vpop.f32.mrb[5].mxu0 }
 0x60a   : > { %v978_v54 = vpop.f32.mrb[6].mxu0 }
 0x60b   : > { %v2574_v55 = vpop.f32.mrb[7].mxu0 }
 0x610   : > { %v1023_v56 = vpop.f32.mrb[20].mxu1  ;;  %v1071_v57 = vpop.f32.mrb[8].mxu0 }
 0x611   : > { %1082 = vrot.lane.b32.xlu1 %v1023_v56, %s3536_s19  ;;  %v2579_v58 = vpop.f32.mrb[21].mxu1  ;;  %1086 = vrot.lane.b32.xlu0 %v1071_v57, %s3535_s29  ;;  %v2585_v59 = vpop.f32.mrb[9].mxu0  ;;  %s3555_s29 = smov 112  }
 0x612   : > { %v1026_v60 = vpop.f32.mrb[22].mxu1  ;;  %v1074_v61 = vpop.f32.mrb[10].mxu0  ;;  %v2387_v59 = vld [vmem:[%s3526_s13] ss:$0 sm:$0xff] }
 0x613   : > { %v2580_v62 = vpop.f32.mrb[23].mxu1  ;;  %v2586_v63 = vpop.f32.mrb[11].mxu0 }
 0x67b   : > { %v1079_v1 = vpop.permute.xlu0 %1078 }
 0x67c   : > { %v1089_v2 = vsel %vm645_vm2, %v927_v46, %v1079_v1 }
 0x683   : > { %v1083_v3 = vpop.permute.xlu1 %1082  ;;  %v1087_v4 = vpop.permute.xlu0 %1086 }
 0x684   : > { %v1091_v5 = vsel %vm1090_vm4, %v1089_v2, %v1083_v3 }
 0x685   : > { %v1093_v6 = vsel %vm1092_vm5, %v1091_v5, %v1087_v4 }
 0x686   : > { %v1094_v7 = vpack.c.bf16 %v1093_v6, %v1093_v6 }
 0x688   : > { %2592 = vmatmul.mubr.msk.bf16.vlgmr.msra.gmra.mrb[24].mxu1 %vm539_vm0, %v1094_v7 }
 0x689   : > { %2619 = vmatprep.mubr.msk.bf16.mxu1 %vm2903_vm1, %v2902_v8  ;;  %2604 = vmatpush3.bf16.msra.mxu1 %v2770_v23 }
 0x68a   : > { %2605 = vmatprep.subr.bf16.mxu1 %v2902_v8 }
 0x68d   : > { %2606 = vmatpush3.bf16.msra.mxu1 %v2771_v34 }
 0x68e   : > { %2607 = vmatprep.subr.bf16.mxu1 %v2902_v8 }
 0x691   : > { %2608 = vmatpush3.bf16.msra.mxu1 %v2772_v35 }
 0x692   : > { %2609 = vmatprep.subr.bf16.mxu1 %v2902_v8 }
 0x695   : > { %2610 = vmatpush3.bf16.msra.mxu1 %v2773_v36 }
 0x696   : > { %2611 = vmatprep.subr.bf16.mxu1 %v2902_v8 }
 0x699   : > { %2612 = vmatpush3.bf16.msra.mxu1 %v2774_v37 }
 0x69a   : > { %2613 = vmatprep.subr.bf16.mxu1 %v2902_v8 }
 0x69d   : > { %2614 = vmatpush3.bf16.msra.mxu1 %v2775_v39 }
 0x69e   : > { %2615 = vmatprep.subr.bf16.mxu1 %v2902_v8 }
 0x6a1   : > { %2616 = vmatpush3.bf16.msra.mxu1 %v2776_v40 }
 0x6a2   : > { %2617 = vmatprep.subr.bf16.mxu1 %v2902_v8 }
 0x6a5   : > { %2618 = vmatpush3.bf16.msra.mxu1 %v2777_v41 }
 0x6a6   : > { %2649 = vmatprep.subr.bf16.mxu1 %v2902_v8 }
 0x75b   : > { %v1148_v9 = vpop.f32.mrb[24].mxu1 }
 0x75c   : > { %v1154_v11 = vadd.f32 %v1148_v9, %v3056_v0  ;;  %v2593_v12 = vpop.f32.mrb[25].mxu1  ;;  %v2768_v0 = vld [vmem:[%s3523_s10] sm:$0xff]   ;;  %v2778_v9 = vld [vmem:[%s3551_s4 + $0x10] sm:$0xff]  }
 0x75d   : > { %v1151_v13 = vpop.f32.mrb[26].mxu1  ;;  %2596 = vmatpush3.bf16.msra.mxu0 %v2768_v0 }
 0x75e   : > { %v3202_v14 = vadd.f32 %v2372_v10, %v1154_v11  ;;  %v2594_v15 = vpop.f32.mrb[27].mxu1  ;;  %2597 = vmatprep.subr.bf16.mxu0 %v2902_v8  ;;  %v2779_v10 = vld [vmem:[%s3551_s4 + $0x18] sm:$0xff]  }
 0x75f   : > { %v2390_v15 = vld [vmem:[%s3552_s2 + $0x1] ss:$0 sm:$0xff] }
 0x760   : > { %v1165_v16 = vsel %vm539_vm0, %v3202_v14, 0.0 }
 0x761   : > { %1166 = vadd.xlane.f32.xlu1 %v1165_v16  ;;  %2598 = vmatpush3.bf16.msra.mxu0 %v2769_v22 }
 0x762   : > { %2623 = vmatprep.subr.bf16.mxu0 %v2902_v8 }
 0x7ee   : > { %v1167_v17 = vpop.xlane.xlu1 %1166 }
 0x7ef   : > { %v1168_v18 = vmul.f32 0.03125, %v1167_v17  ;;  %v2391_v17 = vld [vmem:[%s3553_s3 + $0x1] ss:$0 sm:$0xff] }
 0x7f1   : > { %v1169_v19 = vsub.f32 %v3202_v14, %v1168_v18 }
 0x7f3   : > { %v1170_v20 = vmul.f32 %v1169_v19, %v1169_v19 }
 0x7f5   : > { %v1171_v21 = vsel %vm539_vm0, %v1170_v20, 0.0 }
 0x7f6   : > { %1172 = vadd.xlane.f32.xlu0 %v1171_v21  ;;  %v2397_v21 = vld [vmem:[%s3518_s5 + $0x1] ss:$0 sm:$0xff] }
 0x883   : > { %v1173_v24 = vpop.xlane.xlu0 %1172 }
 0x884   : > { %v1174_v25 = vmul.f32 0.03125, %v1173_v24 }
 0x886   : > { %v1175_v26 = vadd.f32 1e-05, %v1174_v25 }
 0x888   : > { %2810 = vrsqrt.f32 %v1175_v26 }
 0x892   : > { %v2811_v28 = vpop.eup %2810 }
 0x893   : > { %v1177_v29 = vmul.f32 %v2811_v28, %v1169_v19 }
 0x895   : > { %v1184_v27 = vmul.f32 %v2373_v30, %v1177_v29 }
 0x897   : > { %v1191_v32 = vadd.f32 %v2374_v31, %v1184_v27 }
 0x899   : > { %v1192_v33 = vpack.c.bf16 %v1191_v32, %v1191_v32 }
 0x89b   : > { %2600 = vmatmul.mubr.msk.bf16.vlgmr.msra.gmra.mrb[12].mxu0 %vm539_vm0, %v1192_v33 }
 0x89c   : > { %2627 = vmatprep.mubr.msk.bf16.mxu0 %vm2903_vm1, %v2902_v8  ;;  %2624 = vmatpush3.bf16.msra.mxu0 %v2778_v9 }
 0x89d   : > { %2625 = vmatprep.subr.bf16.mxu0 %v2902_v8 }
 0x8a0   : > { %2626 = vmatpush3.bf16.msra.mxu0 %v2779_v10 }
 0x8a1   : > { %2631 = vmatprep.subr.bf16.mxu0 %v2902_v8 }
 0x96e   : > { %v1253_v43 = vpop.f32.mrb[12].mxu0 }
 0x96f   : > { %v1254_v44 = vadd.f32 %v2375_v42, %v1253_v43  ;;  %v2601_v45 = vpop.f32.mrb[13].mxu0 }
 0x970   : > { %v1256_v46 = vpop.f32.mrb[14].mxu0 }
 0x971   : > { %v1260_v47 = vmul.f32 0.044715, %v1254_v44  ;;  %v2602_v48 = vpop.f32.mrb[15].mxu0  ;;  %v1259_v54 = vmul.f32 0.5, %v1254_v44 }
 0x973   : > { %v1261_v49 = vmul.f32 %v1260_v47, %v1254_v44 }
 0x975   : > { %v1262_v50 = vmul.f32 %v1261_v49, %v1254_v44 }
 0x977   : > { %v1263_v51 = vadd.f32 %v1262_v50, %v1254_v44 }
 0x979   : > { %v1264_v52 = vmul.f32 0.7978846, %v1263_v51 }
 0x97b   : > { %2812 = vtanh.f32 %v1264_v52 }
 0x985   : > { %v2813_v53 = vpop.eup %2812 }
 0x986   : > { %v1266_v55 = vadd.f32 1.0, %v2813_v53 }
 0x988   : > { %v1267_v56 = vmul.f32 %v1266_v55, %v1259_v54 }
 0x98a   : > { %v1268_v57 = vpack.c.bf16 %v1267_v56, %v1267_v56 }
 0x98c   : > { %2620 = vmatmul.mubr.bf16.vlgmr.msra.gmra.mrb[28].mxu1 %v1268_v57 }
 0x98d   : > { %2651 = vmatprep.mubr.msk.bf16.mxu1 %vm2903_vm1, %v2902_v8 }
 0xa5f   : > { %v1367_v58 = vpop.f32.mrb[28].mxu1 }
 0xa60   : > { %v1373_v60 = vadd.f32 %v1367_v58, %v3202_v14  ;;  %v2621_v61 = vpop.f32.mrb[29].mxu1 }
 0xa61   : > { %v1370_v62 = vpop.f32.mrb[30].mxu1 }
 0xa62   : > { %v3266_v63 = vadd.f32 %v2387_v59, %v1373_v60  ;;  %v2622_v1 = vpop.f32.mrb[31].mxu1 }
 0xa64   : > { %v1386_v2 = vsel %vm539_vm0, %v3266_v63, 0.0 }
 0xa65   : > { %1387 = vadd.xlane.f32.xlu0 %v1386_v2 }
 0xaf2   : > { %v1388_v3 = vpop.xlane.xlu0 %1387 }
 0xaf3   : > { %v1389_v4 = vmul.f32 0.03125, %v1388_v3 }
 0xaf5   : > { %v1390_v5 = vsub.f32 %v3266_v63, %v1389_v4 }
 0xaf7   : > { %v1391_v6 = vmul.f32 %v1390_v5, %v1390_v5 }
 0xaf9   : > { %v1392_v7 = vsel %vm539_vm0, %v1391_v6, 0.0 }
 0xafa   : > { %1393 = vadd.xlane.f32.xlu1 %v1392_v7 }
 0xb87   : > { %v1394_v11 = vpop.xlane.xlu1 %1393 }
 0xb88   : > { %v1395_v12 = vmul.f32 0.03125, %v1394_v11 }
 0xb8a   : > { %v1396_v13 = vadd.f32 1e-05, %v1395_v12 }
 0xb8c   : > { %2814 = vrsqrt.f32 %v1396_v13 }
 0xb96   : > { %v2815_v14 = vpop.eup %2814 }
 0xb97   : > { %v1398_v16 = vmul.f32 %v2815_v14, %v1390_v5 }
 0xb99   : > { %v1405_v18 = vmul.f32 %v2390_v15, %v1398_v16 }
 0xb9b   : > { %v1412_v19 = vadd.f32 %v2391_v17, %v1405_v18 }
 0xb9d   : > { %v1413_v20 = vpack.c.bf16 %v1412_v19, %v1412_v19 }
 0xb9f   : > { %2628 = vmatmul.mubr.msk.bf16.vlgmr.msra.gmra.mrb[16].mxu0 %vm539_vm0, %v1413_v20 }
 0xba0   : > { %2633 = vmatprep.mubr.msk.bf16.mxu0 %vm2903_vm1, %v2902_v8 }
 0xc72   : > { %v1476_v0 = vpop.f32.mrb[16].mxu0 }
 0xc73   : > { %v1477_v22 = vadd.f32 %v2397_v21, %v1476_v0  ;;  %v2629_v23 = vpop.f32.mrb[17].mxu0 }
 0xc74   : > { %v1479_v24 = vpop.f32.mrb[18].mxu0 }
 0xc75   : > { %v3292_v25 = vpack.c.bf16 %v1477_v22, %v1477_v22  ;;  %v2630_v26 = vpop.f32.mrb[19].mxu0 }
 0xc77   : > { %1486 = vrot.lane.b32.xlu1 %v3292_v25, %s3555_s29  ;;  %1484 = vrot.lane.b32.xlu0 %v3292_v25, %s3556_s30  ;;  %s3560_s30 = smov 8   ;;  %s2460_s29 = sshll.u32 %s3019_s25, 7 }
 0xc78   : > { %s3470_s4 = scalar_lea.hbm %s3529_s16, %s2460_s29  ;;  %s2912_s25 = smov [#allocation2]  }
 0xc7b   : > { %1488 = vrot.lane.b32.xlu1 %v3292_v25, %s3557_s28  ;;  %1490 = vrot.lane.b32.xlu0 %v3292_v25, %s3558_s26  ;;  %s3561_s28 = smov 16  }
 0xce9   : > { %v3302_v28 = vpop.permute.xlu1 %1486  ;;  %v3304_v30 = vpop.permute.xlu0 %1484 }
 0xcea   : > { %1586 = vrot.lane.b32.xlu0 %v3302_v28, %s3558_s26  ;;  %1538 = vrot.lane.b32.xlu1 %v3304_v30, %s3558_s26 }
 0xced   : > { %v3310_v29 = vpop.permute.xlu1 %1488  ;;  %v1491_v31 = vpop.permute.xlu0 %1490 }
 0xcee   : > { %v1496_v27 = vsel %vm645_vm2, %v1491_v31, 0  ;;  %1634 = vrot.lane.b32.xlu1 %v3310_v29, %s3558_s26  ;;  %s3562_s26 = smov 24  }
 0xcef   : > { %2632 = vmatpush3.bf16.xpose.msra.mxu0 %v1496_v27 }
 0xcf0   : > { %2637 = vmatprep.subr.bf16.mxu0 %v2902_v8 }
 0xcf6   : > { %2634 = vmatmul.mubr.msk.bf16.vlgmr.msra.gmra.mrb[20].mxu0 %vm645_vm2, %v3292_v25 }
 0xcf7   : > { %2639 = vmatprep.mubr.msk.bf16.mxu0 %vm2903_vm1, %v2902_v8 }
 0xd5c   : > { %v1539_v32 = vpop.permute.xlu1 %1538  ;;  %v1587_v36 = vpop.permute.xlu0 %1586 }
 0xd5d   : > { %v1544_v33 = vsel %vm645_vm2, %v1539_v32, 0  ;;  %v1592_v37 = vsel %vm645_vm2, %v1587_v36, 0 }
 0xd5e   : > { %2638 = vmatpush3.bf16.xpose.msra.mxu0 %v1544_v33 }
 0xd5f   : > { %2643 = vmatprep.subr.bf16.mxu0 %v2902_v8 }
 0xd60   : > { %v1635_v34 = vpop.permute.xlu1 %1634 }
 0xd61   : > { %v1640_v35 = vsel %vm645_vm2, %v1635_v34, 0 }
 0xd62   : > { %2650 = vmatpush3.bf16.xpose.msra.mxu1 %v1640_v35 }
 0xd63   : > { %2661 = vmatprep.subr.bf16.mxu1 %v2902_v8 }
 0xd65   : > { %2640 = vmatmul.mubr.msk.bf16.vlgmr.msra.gmra.mrb[24].mxu0 %vm645_vm2, %v3304_v30 }
 0xd66   : > { %2644 = vmatpush3.bf16.xpose.msra.mxu0 %v1592_v37  ;;  %2645 = vmatprep.mubr.msk.bf16.mxu0 %vm2903_vm1, %v2902_v8 }
 0xd67   : > { %2655 = vmatprep.subr.bf16.mxu0 %v2902_v8 }
 0xd69   : > { %2652 = vmatmul.mubr.msk.bf16.vlgmr.msra.gmra.mrb[32].mxu1 %vm645_vm2, %v3310_v29 }
 0xd6a   : > { %2663 = vmatprep.mubr.msk.bf16.mxu1 %vm2903_vm1, %v2902_v8 }
 0xd6d   : > { %2646 = vmatmul.mubr.msk.bf16.vlgmr.msra.gmra.mrb[28].mxu0 %vm645_vm2, %v3302_v28 }
 0xd6e   : > { %2657 = vmatprep.mubr.msk.bf16.mxu0 %vm2903_vm1, %v2902_v8 }
 0xdc9   : > { %v1532_v39 = vpop.f32.mrb[20].mxu0 }
 0xdca   : > { %v1533_v40 = vadd.f32 %v1532_v39, %v3139_v38  ;;  %v2635_v41 = vpop.f32.mrb[21].mxu0 }
 0xdcb   : > { %v1535_v42 = vpop.f32.mrb[22].mxu0 }
 0xdcc   : > { %v2636_v43 = vpop.f32.mrb[23].mxu0  ;;  %v1682_v44 = vsel %vm645_vm2, %v1533_v40, -inf }
 0xdcd   : > { %1683 = vmax.xlane.f32.xlu0 %v1682_v44 }
 0xe38   : > { %v1580_v45 = vpop.f32.mrb[24].mxu0 }
 0xe39   : > { %v1581_v46 = vadd.f32 %v1580_v45, %v3139_v38  ;;  %v2641_v47 = vpop.f32.mrb[25].mxu0 }
 0xe3a   : > { %v1583_v48 = vpop.f32.mrb[26].mxu0 }
 0xe3b   : > { %v2642_v49 = vpop.f32.mrb[27].mxu0  ;;  %v1685_v50 = vsel %vm645_vm2, %v1581_v46, -inf }
 0xe3c   : > { %1686 = vmax.xlane.f32.xlu1 %v1685_v50  ;;  %v1676_v51 = vpop.f32.mrb[32].mxu1  ;;  %v2780_v49 = vld [vmem:[%s3519_s6 + $0x10] sm:$0xff]   ;;  %v2781_v50 = vld [vmem:[%s3519_s6 + $0x18] sm:$0xff]  }
 0xe3d   : > { %v2653_v52 = vpop.f32.mrb[33].mxu1  ;;  %v1677_v59 = vadd.f32 %v1676_v51, %v3139_v38 }
 0xe3e   : > { %v1679_v53 = vpop.f32.mrb[34].mxu1 }
 0xe3f   : > { %v2654_v54 = vpop.f32.mrb[35].mxu1  ;;  %v1691_v62 = vsel %vm645_vm2, %v1677_v59, -inf }
 0xe40   : > { %v1628_v55 = vpop.f32.mrb[28].mxu0 }
 0xe41   : > { %v1629_v56 = vadd.f32 %v1628_v55, %v3139_v38  ;;  %v2647_v57 = vpop.f32.mrb[29].mxu0 }
 0xe42   : > { %v1631_v58 = vpop.f32.mrb[30].mxu0 }
 0xe43   : > { %v2648_v60 = vpop.f32.mrb[31].mxu0  ;;  %v1688_v61 = vsel %vm645_vm2, %v1629_v56, -inf }
 0xe44   : > { %1689 = vmax.xlane.f32.xlu0 %v1688_v61 }
 0xe48   : > { %1692 = vmax.xlane.f32.xlu0 %v1691_v62 }
 0xe4d   : > { %1730 = vrot.lane.b32.xlu1 %v3292_v25, %s3559_s23 }
 0xe5a   : > { %v1684_v1 = vpop.xlane.xlu0 %1683 }
 0xe5b   : > { %v1694_v2 = vsub.f32 %v1533_v40, %v1684_v1 }
 0xe5d   : > { %v1698_v3 = vmul.f32 1.442695, %v1694_v2 }
 0xe5f   : > { %2816 = vpow2.f32 %v1698_v3 }
 0xe69   : > { %v2817_v4 = vpop.eup %2816 }
 0xe6a   : > { %v1706_v5 = vsel %vm645_vm2, %v2817_v4, 0.0 }
 0xe71   : > { %1707 = vadd.xlane.f32.xlu1 %v1706_v5 }
 0xe82   : > { %1826 = vrot.lane.b32.xlu1 %v3302_v28, %s3559_s23 }
 0xec9   : > { %v1687_v38 = vpop.xlane.xlu1 %1686 }
 0xeca   : > { %v1695_v6 = vsub.f32 %v1581_v46, %v1687_v38 }
 0xecc   : > { %v1700_v7 = vmul.f32 1.442695, %v1695_v6 }
 0xecd   : > { %v1731_v9 = vpop.permute.xlu1 %1730 }
 0xece   : > { %2818 = vpow2.f32 %v1700_v7  ;;  %v1736_v10 = vsel %vm889_vm3, %v1731_v9, 0  ;;  %v2417_v9 = vld [vmem:[%s3520_s7 + $0x1] ss:$0 sm:$0xff] }
 0xecf   : > { %2656 = vmatpush3.bf16.msra.mxu0 %v1736_v10 }
 0xed0   : > { %2667 = vmatprep.subr.bf16.mxu0 %v2902_v8 }
 0xed1   : > { %v1690_v11 = vpop.xlane.xlu0 %1689 }
 0xed2   : > { %v1696_v12 = vsub.f32 %v1629_v56, %v1690_v11 }
 0xed4   : > { %v1702_v13 = vmul.f32 1.442695, %v1696_v12 }
 0xed5   : > { %v1693_v14 = vpop.xlane.xlu0 %1692 }
 0xed6   : > { %2820 = vpow2.f32 %v1702_v13  ;;  %v1697_v15 = vsub.f32 %v1677_v59, %v1693_v14 }
 0xed8   : > { %v2819_v16 = vpop.eup %2818  ;;  %v1704_v17 = vmul.f32 1.442695, %v1697_v15 }
 0xed9   : > { %v1709_v18 = vsel %vm645_vm2, %v2819_v16, 0.0 }
 0xeda   : > { %2822 = vpow2.f32 %v1704_v17  ;;  %1710 = vadd.xlane.f32.xlu0 %v1709_v18 }
 0xee0   : > { %v2821_v19 = vpop.eup %2820 }
 0xee1   : > { %v1712_v20 = vsel %vm645_vm2, %v2821_v19, 0.0 }
 0xee2   : > { %1713 = vadd.xlane.f32.xlu1 %v1712_v20 }
 0xee4   : > { %v2823_v21 = vpop.eup %2822 }
 0xee5   : > { %v1715_v0 = vsel %vm645_vm2, %v2823_v21, 0.0 }
 0xee6   : > { %1716 = vadd.xlane.f32.xlu0 %v1715_v0  ;;  %v2784_v0 = vld [vmem:[%s3525_s12 + $0x40] sm:$0xff]  }
 0xef3   : > { %1874 = vrot.lane.b32.xlu1 %v3310_v29, %s3559_s23 }
 0xefc   : > { %1778 = vrot.lane.b32.xlu0 %v3304_v30, %s3559_s23 }
 0xefe   : > { %v1708_v22 = vpop.xlane.xlu1 %1707 }
 0xeff   : > { %2824 = vrcp.f32 %v1708_v22 }
 0xf02   : > { %v1827_v25 = vpop.permute.xlu1 %1826 }
 0xf03   : > { %v1832_v28 = vsel %vm889_vm3, %v1827_v25, 0 }
 0xf09   : > { %v2825_v23 = vpop.eup %2824 }
 0xf0a   : > { %v1722_v24 = vmul.f32 %v2825_v23, %v2817_v4 }
 0xf0c   : > { %v1726_v26 = vpack.c.bf16 %v1722_v24, %v1722_v24 }
 0xf0e   : > { %2658 = vmatmul.mubr.msk.bf16.vlgmr.msra.gmra.mrb[32].mxu0 %vm645_vm2, %v1726_v26  ;;  %v2420_v26 = vld [vmem:[%s3521_s8 + $0x1] ss:$0 sm:$0xff] }
 0xf0f   : > { %2668 = vmatpush3.bf16.msra.mxu0 %v1832_v28  ;;  %2669 = vmatprep.mubr.msk.bf16.mxu0 %vm2903_vm1, %v2902_v8 }
 0xf10   : > { %2679 = vmatprep.subr.bf16.mxu0 %v2902_v8 }
 0xf67   : > { %v1711_v29 = vpop.xlane.xlu0 %1710 }
 0xf68   : > { %2826 = vrcp.f32 %v1711_v29  ;;  %v2421_v29 = vld [vmem:[%s3522_s9 + $0x1] ss:$0 sm:$0xff] }
 0xf6f   : > { %v1714_v31 = vpop.xlane.xlu1 %1713 }
 0xf70   : > { %2828 = vrcp.f32 %v1714_v31 }
 0xf72   : > { %v2827_v30 = vpop.eup %2826 }
 0xf73   : > { %v1717_v27 = vpop.xlane.xlu0 %1716  ;;  %v1723_v32 = vmul.f32 %v2827_v30, %v2819_v16  ;;  %v1875_v35 = vpop.permute.xlu1 %1874 }
 0xf74   : > { %2830 = vrcp.f32 %v1717_v27  ;;  %v1880_v40 = vsel %vm889_vm3, %v1875_v35, 0  ;;  %v2788_v35 = vld [vmem:[%s3525_s12 + $0x60] sm:$0xff]  }
 0xf75   : > { %v1727_v37 = vpack.c.bf16 %v1723_v32, %v1723_v32  ;;  %v2785_v32 = vld [vmem:[%s3525_s12 + $0x48] sm:$0xff]  }
 0xf77   : > { %v1779_v33 = vpop.permute.xlu0 %1778 }
 0xf78   : > { %v1784_v34 = vsel %vm889_vm3, %v1779_v33, 0  ;;  %v2786_v33 = vld [vmem:[%s3525_s12 + $0x50] sm:$0xff]  }
 0xf79   : > { %2662 = vmatpush3.bf16.msra.mxu1 %v1784_v34  ;;  %v2787_v34 = vld [vmem:[%s3525_s12 + $0x58] sm:$0xff]  }
 0xf7a   : > { %v2829_v36 = vpop.eup %2828  ;;  %2673 = vmatprep.subr.bf16.mxu1 %v2902_v8 }
 0xf7b   : > { %v1724_v39 = vmul.f32 %v2829_v36, %v2821_v19  ;;  %v2789_v36 = vld [vmem:[%s3525_s12 + $0x68] sm:$0xff]  }
 0xf7c   : > { %2664 = vmatmul.mubr.msk.bf16.vlgmr.msra.gmra.mrb[36].mxu1 %vm645_vm2, %v1727_v37  ;;  %v2790_v37 = vld [vmem:[%s3525_s12 + $0x70] sm:$0xff]  }
 0xf7d   : > { %2674 = vmatpush3.bf16.msra.mxu1 %v1880_v40  ;;  %v1728_v41 = vpack.c.bf16 %v1724_v39, %v1724_v39  ;;  %2675 = vmatprep.mubr.msk.bf16.mxu1 %vm2903_vm1, %v2902_v8  ;;  %v2791_v39 = vld [vmem:[%s3525_s12 + $0x78] sm:$0xff]   ;;  %v2427_v40 = vld [vmem:[%s3524_s11 + $0x1] ss:$0 sm:$0xff] }
 0xf7e   : > { %v2831_v42 = vpop.eup %2830  ;;  %2687 = vmatprep.subr.bf16.mxu1 %v2902_v8 }
 0xf7f   : > { %v1725_v43 = vmul.f32 %v2831_v42, %v2823_v21  ;;  %2670 = vmatmul.mubr.msk.bf16.vlgmr.msra.gmra.mrb[36].mxu0 %vm645_vm2, %v1728_v41  ;;  %v2783_v21 = vld [vmem:[%s3523_s10 + $0x18] sm:$0xff]  }
 0xf80   : > { %2683 = vmatprep.mubr.msk.bf16.mxu0 %vm2903_vm1, %v2902_v8  ;;  %2680 = vmatpush3.bf16.msra.mxu0 %v2780_v49 }
 0xf81   : > { %v1729_v44 = vpack.c.bf16 %v1725_v43, %v1725_v43  ;;  %2681 = vmatprep.subr.bf16.mxu0 %v2902_v8 }
 0xf84   : > { %2676 = vmatmul.mubr.msk.bf16.vlgmr.msra.gmra.mrb[40].mxu1 %vm645_vm2, %v1729_v44  ;;  %2682 = vmatpush3.bf16.msra.mxu0 %v2781_v50 }
 0xf85   : > { %2691 = vmatprep.mubr.msk.bf16.mxu1 %vm2903_vm1, %v2902_v8  ;;  %2695 = vmatprep.subr.bf16.mxu0 %v2902_v8 }
 0xfe1   : > { %v1772_v45 = vpop.f32.mrb[32].mxu0 }
 0xfe2   : > { %v2659_v46 = vpop.f32.mrb[33].mxu0 }
 0xfe3   : > { %v1775_v47 = vpop.f32.mrb[34].mxu0 }
 0xfe4   : > { %v2660_v48 = vpop.f32.mrb[35].mxu0 }
0x104f   : > { %v1820_v51 = vpop.f32.mrb[36].mxu1 }
0x1050   : > { %1923 = vrot.lane.b32.xlu0 %v1820_v51, %s3560_s30  ;;  %v2665_v52 = vpop.f32.mrb[37].mxu1 }
0x1051   : > { %v1823_v53 = vpop.f32.mrb[38].mxu1 }
0x1052   : > { %v2666_v54 = vpop.f32.mrb[39].mxu1  ;;  %v1868_v55 = vpop.f32.mrb[36].mxu0 }
0x1053   : > { %1927 = vrot.lane.b32.xlu1 %v1868_v55, %s3561_s28  ;;  %v2671_v56 = vpop.f32.mrb[37].mxu0  ;;  %s523_s28 = sand.u32 1, %s2892_s22  }
0x1054   : > { %v1871_v57 = vpop.f32.mrb[38].mxu0  ;;  %v2456_v56 = vld [vmem:[%s3526_s13 + $0x1] ss:$0 sm:$0xff]  ;;  %s2264_s23 = scalar_lea.sflag [#allocation3], %s523_s28 }
0x1055   : > { %v2672_v58 = vpop.f32.mrb[39].mxu0 }
0x1057   : > { %v1916_v59 = vpop.f32.mrb[40].mxu1 }
0x1058   : > { %1931 = vrot.lane.b32.xlu0 %v1916_v59, %s3562_s26  ;;  %v2677_v60 = vpop.f32.mrb[41].mxu1  ;;  %s2352_s26 = sshll.u32 %s523_s28, 3 }
0x1059   : > { %v1919_v61 = vpop.f32.mrb[42].mxu1  ;;  %s525_s30 = scalar_lea.vmem [#allocation2], %s2352_s26  ;;  %s2842_s26 = sshll.u32 %s2912_s25, 4  ;;  %s2843_s26 = int_to_ptr.vmem [resolvable:$false] %s2842_s26 }
0x105a   : > { %v2678_v62 = vpop.f32.mrb[43].mxu1  ;;  %s2277_s1 = sshll.u32 %s525_s30, 4  ;;  %s2844_s20 = scalar_lea.vmem %s2843_s26, 256  ;;  %s3472_s1 = int_to_ptr.vmem [resolvable:$true] %s2277_s1 }
0x105b   : > { %s2838_s18 = scalar_lea.vmem %s3472_s1, 128  ;;  %p2845_p0 = scmp.lt.s32.totalorder %s3472_s1, %s2843_s26 }
0x105c   : > { %p2839_p11 = scmp.ne.s32.totalorder %s3472_s1, %s2838_s18  ;;  %p2846_p1 = scmp.lt.s32.totalorder %s2844_s20, %s2838_s18 }
0x105e   : > { %p2840_p12 = pnand %p2839_p11, %p3036_p5  ;;  %p2847_p2 = por %p2846_p1, %p2845_p0 }
0x1060   : > { %p2841_p13 = pneg %p2840_p12 }
0x1062   : > { %p2848_p3 = pnand %p2847_p2, %p2841_p13 }
0x10c2   : > { %v1924_v1 = vpop.permute.xlu0 %1923 }
0x10c3   : > { %v1934_v3 = vsel %vm645_vm2, %v1772_v45, %v1924_v1 }
0x10c5   : > { %v1928_v2 = vpop.permute.xlu1 %1927 }
0x10c6   : > { %v1935_v4 = vsel %vm1090_vm4, %v1934_v3, %v1928_v2 }
0x10ca   : > { %v1932_v5 = vpop.permute.xlu0 %1931 }
0x10cb   : > { %v1936_v38 = vsel %vm1092_vm5, %v1935_v4, %v1932_v5 }
0x10cc   : > { %v1937_v6 = vpack.c.bf16 %v1936_v38, %v1936_v38 }
0x10ce   : > { %2684 = vmatmul.mubr.msk.bf16.vlgmr.msra.gmra.mrb[40].mxu0 %vm539_vm0, %v1937_v6 }
0x10cf   : > { %2711 = vmatprep.mubr.msk.bf16.mxu0 %vm2903_vm1, %v2902_v8  ;;  %2696 = vmatpush3.bf16.msra.mxu0 %v2784_v0 }
0x10d0   : > { %2697 = vmatprep.subr.bf16.mxu0 %v2902_v8 }
0x10d3   : > { %2698 = vmatpush3.bf16.msra.mxu0 %v2785_v32 }
0x10d4   : > { %2699 = vmatprep.subr.bf16.mxu0 %v2902_v8 }
0x10d7   : > { %2700 = vmatpush3.bf16.msra.mxu0 %v2786_v33 }
0x10d8   : > { %2701 = vmatprep.subr.bf16.mxu0 %v2902_v8 }
0x10db   : > { %2702 = vmatpush3.bf16.msra.mxu0 %v2787_v34 }
0x10dc   : > { %2703 = vmatprep.subr.bf16.mxu0 %v2902_v8 }
0x10df   : > { %2704 = vmatpush3.bf16.msra.mxu0 %v2788_v35 }
0x10e0   : > { %2705 = vmatprep.subr.bf16.mxu0 %v2902_v8 }
0x10e3   : > { %2706 = vmatpush3.bf16.msra.mxu0 %v2789_v36 }
0x10e4   : > { %2707 = vmatprep.subr.bf16.mxu0 %v2902_v8 }
0x10e7   : > { %2708 = vmatpush3.bf16.msra.mxu0 %v2790_v37 }
0x10e8   : > { %2709 = vmatprep.subr.bf16.mxu0 %v2902_v8 }
0x10eb   : > { %2710 = vmatpush3.bf16.msra.mxu0 %v2791_v39 }
0x11a1   : > { %v1992_v7 = vpop.f32.mrb[40].mxu0 }
0x11a2   : > { %v1998_v10 = vadd.f32 %v1992_v7, %v3266_v63  ;;  %v2685_v11 = vpop.f32.mrb[41].mxu0  ;;  %v2782_v63 = vld [vmem:[%s3523_s10 + $0x10] sm:$0xff]  }
0x11a3   : > { %v1995_v12 = vpop.f32.mrb[42].mxu0  ;;  %2688 = vmatpush3.bf16.msra.mxu1 %v2782_v63 }
0x11a4   : > { %v3399_v13 = vadd.f32 %v2417_v9, %v1998_v10  ;;  %v2686_v14 = vpop.f32.mrb[43].mxu0  ;;  %2689 = vmatprep.subr.bf16.mxu1 %v2902_v8  ;;  %v2457_v10 = vld [vmem:[%s3527_s14] ss:$0 sm:$0xff] }
0x11a5   : > { %v2458_v12 = vld [vmem:[%s3528_s15] ss:$0 sm:$0xff] }
0x11a6   : > { %v2012_v15 = vsel %vm539_vm0, %v3399_v13, 0.0 }
0x11a7   : > { %2013 = vadd.xlane.f32.xlu1 %v2012_v15  ;;  %2690 = vmatpush3.bf16.msra.mxu1 %v2783_v21 }
0x1234   : > { %v2014_v16 = vpop.xlane.xlu1 %2013 }
0x1235   : > { %v2015_v17 = vmul.f32 0.03125, %v2014_v16 }
0x1237   : > { %v2016_v18 = vsub.f32 %v3399_v13, %v2015_v17 }
0x1239   : > { %v2017_v19 = vmul.f32 %v2016_v18, %v2016_v18 }
0x123b   : > { %v2018_v20 = vsel %vm539_vm0, %v2017_v19, 0.0 }
0x123c   : > { %2019 = vadd.xlane.f32.xlu0 %v2018_v20 }
0x12c9   : > { %v2020_v22 = vpop.xlane.xlu0 %2019 }
0x12ca   : > { %v2021_v23 = vmul.f32 0.03125, %v2020_v22 }
0x12cc   : > { %v2022_v24 = vadd.f32 1e-05, %v2021_v23 }
0x12ce   : > { %2832 = vrsqrt.f32 %v2022_v24 }
0x12d8   : > { %v2833_v25 = vpop.eup %2832 }
0x12d9   : > { %v2024_v28 = vmul.f32 %v2833_v25, %v2016_v18 }
0x12db   : > { %v2031_v31 = vmul.f32 %v2420_v26, %v2024_v28 }
0x12dd   : > { %v2038_v30 = vadd.f32 %v2421_v29, %v2031_v31 }
0x12df   : > { %v2039_v27 = vpack.c.bf16 %v2038_v30, %v2038_v30 }
0x12e1   : > { %2692 = vmatmul.mubr.msk.bf16.vlgmr.msra.gmra.mrb[44].mxu1 %vm539_vm0, %v2039_v27 }
0x13b4   : > { %v2102_v41 = vpop.f32.mrb[44].mxu1 }
0x13b5   : > { %v2103_v42 = vadd.f32 %v2427_v40, %v2102_v41  ;;  %v2693_v43 = vpop.f32.mrb[45].mxu1 }
0x13b6   : > { %v2105_v44 = vpop.f32.mrb[46].mxu1 }
0x13b7   : > { %v2109_v45 = vmul.f32 0.044715, %v2103_v42  ;;  %v2694_v46 = vpop.f32.mrb[47].mxu1  ;;  %v2108_v52 = vmul.f32 0.5, %v2103_v42 }
0x13b9   : > { %v2110_v47 = vmul.f32 %v2109_v45, %v2103_v42 }
0x13bb   : > { %v2111_v48 = vmul.f32 %v2110_v47, %v2103_v42 }
0x13bd   : > { %v2112_v49 = vadd.f32 %v2111_v48, %v2103_v42 }
0x13bf   : > { %v2113_v50 = vmul.f32 0.7978846, %v2112_v49 }
0x13c1   : > { %2834 = vtanh.f32 %v2113_v50 }
0x13cb   : > { %v2835_v51 = vpop.eup %2834 }
0x13cc   : > { %v2115_v53 = vadd.f32 1.0, %v2835_v51 }
0x13ce   : > { %v2116_v8 = vmul.f32 %v2115_v53, %v2108_v52 }
0x13d0   : > { %v2117_v54 = vpack.c.bf16 %v2116_v8, %v2116_v8 }
0x13d2   : > { %2712 = vmatmul.mubr.bf16.vlgmr.msra.gmra.mrb[44].mxu0 %v2117_v54 }
0x14a5   : > { %v2217_v55 = vpop.f32.mrb[44].mxu0 }
0x14a6   : > { %v2223_v57 = vadd.f32 %v2217_v55, %v3399_v13  ;;  %v2713_v58 = vpop.f32.mrb[45].mxu0 }
0x14a7   : > { %v2220_v59 = vpop.f32.mrb[46].mxu0 }
0x14a8   : > { %v2714_v60 = vpop.f32.mrb[47].mxu0  ;;  %v2232_v61 = vadd.f32 %v2456_v56, %v2223_v57 }
0x14aa   : > { %v2235_v62 = vsel %vm539_vm0, %v2232_v61, 0.0 }
0x14ab   : > { %2236 = vadd.xlane.f32.xlu0 %v2235_v62 }
0x1538   : > { %v2237_v1 = vpop.xlane.xlu0 %2236 }
0x1539   : > { %v2238_v2 = vmul.f32 0.03125, %v2237_v1 }
0x153b   : > { %v2239_v3 = vsub.f32 %v2232_v61, %v2238_v2 }
0x153d   : > { %v2240_v4 = vmul.f32 %v2239_v3, %v2239_v3 }
0x153f   : > { %v2241_v5 = vsel %vm539_vm0, %v2240_v4, 0.0 }
0x1540   : > { %2242 = vadd.xlane.f32.xlu1 %v2241_v5 }
0x15cd   : > { %v2243_v38 = vpop.xlane.xlu1 %2242 }
0x15ce   : > { %v2244_v6 = vmul.f32 0.03125, %v2243_v38 }
0x15d0   : > { %v2245_v7 = vadd.f32 1e-05, %v2244_v6 }
0x15d2   : > { %2836 = vrsqrt.f32 %v2245_v7 }
0x15dc   : > { %v2837_v9 = vpop.eup %2836 }
0x15dd   : > { %v2247_v11 = vmul.f32 %v2837_v9, %v2239_v3 }
0x15df   : > { %v2254_v13 = vmul.f32 %v2457_v10, %v2247_v11 }
0x15e1   : > { %v2261_v14 = vadd.f32 %v2458_v12, %v2254_v13 }
0x15e3   : > { %2262 = vst.msk [vmem:[%s525_s30] sm:$0xff] %vm539_vm0, %v2261_v14 }
0x15e4   : > { %2851 = shalt.err (!%p2848_p3)
}
0x15e5   : > { %s2852_s2 = scalar_lea.hbm %s3470_s4, 128  ;;  %s2856_s19 = scalar_lea.hbm %s3529_s16, 256 }
0x15e6   : > { %p2853_p4 = scmp.ne.s32.totalorder %s3470_s4, %s2852_s2  ;;  %p2857_p9 = scmp.lt.u32.totalorder %s3470_s4, %s3529_s16 }
0x15e7   : > { %p2858_p10 = scmp.lt.u32.totalorder %s2856_s19, %s2852_s2  ;;  %p2860_p12 = scmp.lt.u32.totalorder %s2852_s2, %s3470_s4 }
0x15e8   : > { %p2854_p7 = pnand %p2853_p4, %p3036_p5 }
0x15e9   : > { %p2859_p11 = por %p2858_p10, %p2857_p9 }
0x15ea   : > { %p2855_p8 = pneg %p2854_p7 }
0x15eb   : > { %p2861_p13 = por %p2860_p12, %p2859_p11 }
0x15ed   : > { %p2862_p0 = pnand %p2861_p13, %p2855_p8 }
0x15ef   : > { %2865 = shalt.err (!%p2862_p0)
}
0x15f0   : > { %2715 = dma.vmem_to_hbm [thread:$0]  (%p3036_p5), %s3472_s1, 128, %s3470_s4, %s2264_s23  }
0x15f1 PF: > { %p2721_p1 = scmp.ge.s32.totalorder %s2900_s24, 2  ;;  %s2289_s18 = sand.u32 1, %s2888_s21  }
0x15f2   : > { %s2290_s25 = scalar_lea.sflag [#allocation3], %s2289_s18 }
0x15f3   : > { %p2718_p2 = pnand %p2721_p1, %p3040_p6 }
0x15f5   : > { %2883 = dma.done.wait (!%p2718_p2), %s2290_s25, 128  }
0x15f6   : > { %2885 = vsyncadd (!%p2718_p2), %s2290_s25, 4294967168  ;;  %s3563_s26 = sld [smem:[#allocation5_spill]]  ;;  %s3564_s23 = sld [smem:[#allocation6_spill]] }
0x15f7   : > { %p26_p3 = scmp.ge.s32.totalorder %s3023_s27, 4   ;;  %s3565_s21 = smov %s2892_s22 }
0x15f8   : > { %s3567_s24 = smov %s3023_s27 }
0x15f9   :  { %28 = sbr.rel (!%p26_p3) target bundleno = 9 (0x9), region = 134 }
0x15fc   : > { %s3566_s22 = smov %s3563_s26 }
0x1600   :  { %2295 = vsyncpa [#allocation3], 1 }
0x1601   :  { %2297 = vsyncpa [#allocation3 + $0x1], 1 }

</bundles_post_ra>
